<compile_context>
chip_gen: v5e
topology: v5e:2x2
jax: 0.10.0
libtpu: 0.0.40
codegen_flags: <defaults>
</compile_context>

<pallas_src>
import functools
import math

import jax
import jax.numpy as jnp
from jax.experimental import pallas as pl
from jax.experimental.pallas import tpu as pltpu

NUM_LABELS = 42  # len(constant.LABEL_TO_ID) for TACRED
LANE = 128


def _round_up(x, m):
    return ((x + m - 1) // m) * m


def _row_tiling(M, target):
    """Return (tm, Mp): padded row count and row tile.

    If M <= target -> single full block (always legal, no padding).
    Else pad M to a multiple of 128 (NOT of the tile) and pick the largest
    tile in {target, target/2, ..., 128} that divides Mp exactly.
    """
    if M <= target:
        return M, M
    Mp = _round_up(M, 128)
    tm = target
    while Mp % tm:
        tm //= 2
    return tm, Mp


# ----------------------------------------------------------------------------
# Capability probes (guarded so the script always runs cleanly).
# ----------------------------------------------------------------------------
_INV_KW = None


def _invariant_kwargs():
    """kwargs that single-buffer a grid-invariant BlockSpec (pl.Buffered(1)).

    Probed once with a tiny pallas_call; falls back to default (double-
    buffered) behaviour if the running jax version rejects it.
    """
    global _INV_KW
    if _INV_KW is None:
        try:
            kw = {"pipeline_mode": pl.Buffered(1)}

            def _probe(x_ref, w_ref, o_ref):
                o_ref[...] = x_ref[...] + w_ref[...]

            z = jnp.zeros((8, 128), jnp.float32)
            out = pl.pallas_call(
                _probe,
                out_shape=jax.ShapeDtypeStruct((8, 128), jnp.float32),
                grid=(2,),
                in_specs=[pl.BlockSpec((8, 128), lambda i: (0, 0)),
                          pl.BlockSpec((8, 128), lambda i: (0, 0), **kw)],
                out_specs=pl.BlockSpec((8, 128), lambda i: (0, 0)),
            )(z, z)
            jax.block_until_ready(out)
            _INV_KW = kw
        except Exception:
            _INV_KW = {}
    return _INV_KW


@functools.lru_cache(maxsize=None)
def _vmem_limit_bytes():
    """Scoped-VMEM ceiling with headroom (v7x: 64 MiB phys; v5e/v6e: 128 MiB)."""
    try:
        return int(pltpu.get_tpu_info().vmem_capacity_bytes * 7 // 8)
    except Exception:
        return None


def _compiler_params(dims):
    limit = _vmem_limit_bytes()
    if limit is not None:
        return pltpu.CompilerParams(dimension_semantics=dims,
                                    vmem_limit_bytes=limit)
    return pltpu.CompilerParams(dimension_semantics=dims)


# ----------------------------------------------------------------------------
# Kernel 1: y = act(x @ w + b)        (FFN up-projection)
# ----------------------------------------------------------------------------
def _linear_kernel(x_ref, w_ref, b_ref, o_ref, *, act):
    y = jnp.dot(x_ref[...], w_ref[...], preferred_element_type=jnp.float32)
    y = y + b_ref[...]
    if act == "gelu":
        # tanh-approx GELU (BERT "gelu_new"), evaluated in bf16: the bf16
        # VPU/EUP path on v6e/v7x halves VALU/EUP pressure so the kernel stays
        # MXU-bound.  (On v5e it is hidden under the slower MXU either way.)
        yb = y.astype(jnp.bfloat16)
        yb = 0.5 * yb * (1.0 + jnp.tanh(
            0.7978845608028654 * (yb + 0.044715 * yb * yb * yb)))
        o_ref[...] = yb.astype(o_ref.dtype)
    else:
        o_ref[...] = y.astype(o_ref.dtype)


def pallas_linear(x, w, b, act="none", out_dtype=jnp.bfloat16,
                  tm_target=512, tn_target=512):
    """y = act(x @ w + b); x:[M,K] bf16, w:[K,N] bf16, b:[N] f32."""
    M, K = x.shape
    N = w.shape[1]
    tm, Mp = _row_tiling(M, tm_target)
    # Tile N only when it is wide enough to stress VMEM (inter-sized outputs);
    # x is re-read per N tile, which is cheap relative to the weight traffic.
    tn = tn_target if (N >= 2048 and N % tn_target == 0) else N
    gm, gn = Mp // tm, N // tn
    xp = x if Mp == M else jnp.pad(x, ((0, Mp - M), (0, 0)))
    b2 = b.reshape(1, N).astype(jnp.float32)
    inv = _invariant_kwargs() if gn == 1 else {}
    out = pl.pallas_call(
        functools.partial(_linear_kernel, act=act),
        out_shape=jax.ShapeDtypeStruct((Mp, N), out_dtype),
        grid=(gm, gn),
        in_specs=[
            pl.BlockSpec((tm, K), lambda i, j: (i, 0)),
            pl.BlockSpec((K, tn), lambda i, j: (0, j), **inv),
            pl.BlockSpec((1, tn), lambda i, j: (0, j), **inv),
        ],
        out_specs=pl.BlockSpec((tm, tn), lambda i, j: (i, j)),
        compiler_params=_compiler_params(("parallel", "parallel")),
    )(xp, w, b2)
    return out if Mp == M else out[:M]


# ----------------------------------------------------------------------------
# Kernel 2: LayerNorm(x @ w + b + residual)   (attn out-proj + LN1, FFN down + LN2)
# ----------------------------------------------------------------------------
def _linear_res_ln_kernel(x_ref, w_ref, b_ref, r_ref, g_ref, beta_ref, o_ref):
    y = jnp.dot(x_ref[...], w_ref[...], preferred_element_type=jnp.float32)
    y = y + b_ref[...] + r_ref[...].astype(jnp.float32)
    mu = jnp.mean(y, axis=-1, keepdims=True)
    var = jnp.mean((y - mu) * (y - mu), axis=-1, keepdims=True)
    inv = jax.lax.rsqrt(var + 1e-12)
    o_ref[...] = (((y - mu) * inv) * g_ref[...] + beta_ref[...]).astype(o_ref.dtype)


def pallas_linear_res_ln(x, w, b, res, gamma, beta,
                         out_dtype=jnp.bfloat16, tm_target=512):
    M, K = x.shape
    N = w.shape[1]
    tm, Mp = _row_tiling(M, tm_target)
    xp = x if Mp == M else jnp.pad(x, ((0, Mp - M), (0, 0)))
    rp = res if Mp == M else jnp.pad(res, ((0, Mp - M), (0, 0)))
    b2 = b.reshape(1, N).astype(jnp.float32)
    g2 = gamma.reshape(1, N).astype(jnp.float32)
    be2 = beta.reshape(1, N).astype(jnp.float32)
    inv = _invariant_kwargs()
    out = pl.pallas_call(
        _linear_res_ln_kernel,
        out_shape=jax.ShapeDtypeStruct((Mp, N), out_dtype),
        grid=(Mp // tm,),
        in_specs=[
            pl.BlockSpec((tm, K), lambda i: (i, 0)),
            pl.BlockSpec((K, N), lambda i: (0, 0), **inv),
            pl.BlockSpec((1, N), lambda i: (0, 0), **inv),
            pl.BlockSpec((tm, N), lambda i: (i, 0)),
            pl.BlockSpec((1, N), lambda i: (0, 0), **inv),
            pl.BlockSpec((1, N), lambda i: (0, 0), **inv),
        ],
        out_specs=pl.BlockSpec((tm, N), lambda i: (i, 0)),
        compiler_params=_compiler_params(("parallel",)),
    )(xp, w, b2, rp, g2, be2)
    return out if Mp == M else out[:M]


# ----------------------------------------------------------------------------
# Kernel 3: row-tiled LayerNorm (embedding LN)
# ----------------------------------------------------------------------------
def _ln_kernel(x_ref, g_ref, b_ref, o_ref):
    x = x_ref[...].astype(jnp.float32)
    mu = jnp.mean(x, axis=-1, keepdims=True)
    var = jnp.mean((x - mu) * (x - mu), axis=-1, keepdims=True)
    inv = jax.lax.rsqrt(var + 1e-12)
    o_ref[...] = (((x - mu) * inv) * g_ref[...] + b_ref[...]).astype(o_ref.dtype)


def pallas_layernorm(x, gamma, beta, out_dtype=jnp.bfloat16, tm_target=512):
    M, H = x.shape
    tm, Mp = _row_tiling(M, tm_target)
    xp = x if Mp == M else jnp.pad(x, ((0, Mp - M), (0, 0)))
    g2 = gamma.reshape(1, H).astype(jnp.float32)
    b2 = beta.reshape(1, H).astype(jnp.float32)
    inv = _invariant_kwargs()
    out = pl.pallas_call(
        _ln_kernel,
        out_shape=jax.ShapeDtypeStruct((Mp, H), out_dtype),
        grid=(Mp // tm,),
        in_specs=[
            pl.BlockSpec((tm, H), lambda i: (i, 0)),
            pl.BlockSpec((1, H), lambda i: (0, 0), **inv),
            pl.BlockSpec((1, H), lambda i: (0, 0), **inv),
        ],
        out_specs=pl.BlockSpec((tm, H), lambda i: (i, 0)),
        compiler_params=_compiler_params(("parallel",)),
    )(xp, g2, b2)
    return out if Mp == M else out[:M]


# ----------------------------------------------------------------------------
# Kernel 4: fused QKV projection + multi-head self-attention.
# One grid step per batch element; x[S,H] @ wqkv[H,3H] is done in-kernel into a
# bf16 VMEM scratch (no HBM round trip for the QKV slab), then each head's
# context is written directly into its output-column slice (no concatenate).
# ----------------------------------------------------------------------------
def _qkv_attention_kernel(x_ref, w_ref, b_ref, m_ref, o_ref, qkv_sc,
                          *, nh, dh, scale):
    H = nh * dh
    x = x_ref[0]                                            # [S, H] bf16
    qkv = jnp.dot(x, w_ref[...], preferred_element_type=jnp.float32)
    qkv_sc[...] = (qkv + b_ref[...]).astype(qkv_sc.dtype)   # [S, 3H] bf16
    bias = m_ref[0]                                         # [1, S]  additive mask
    # TODO(synk): for dh not a multiple of 128 the per-head column slices below
    # cross lane tiles (XLU relayout); a head-major [3, nh, S, dh] layout (or a
    # flash-style KV-tiled loop for long S) would remove those copies.
    for h in range(nh):
        q = qkv_sc[:, h * dh:(h + 1) * dh]
        k = qkv_sc[:, H + h * dh:H + (h + 1) * dh]
        v = qkv_sc[:, 2 * H + h * dh:2 * H + (h + 1) * dh]
        s = jax.lax.dot_general(q, k, (((1,), (1,)), ((), ())),
                                preferred_element_type=jnp.float32)
        s = s * scale + bias
        s = s - jnp.max(s, axis=-1, keepdims=True)
        p = jnp.exp(s)
        p = p * pl.reciprocal(jnp.sum(p, axis=-1, keepdims=True), approx=True)
        ctx = jnp.dot(p.astype(v.dtype), v, preferred_element_type=jnp.float32)
        o_ref[0, :, h * dh:(h + 1) * dh] = ctx.astype(o_ref.dtype)


def pallas_qkv_attention(x, wqkv, bqkv, add_mask, nh):
    """x:[B,S,H] bf16, wqkv:[H,3H] bf16, bqkv:[3H] f32, add_mask:[B,1,S] f32."""
    B, S, H = x.shape
    threeH = wqkv.shape[1]
    dh = H // nh
    scale = 1.0 / math.sqrt(dh)
    inv = _invariant_kwargs()
    # TODO(synk): for tiny S, pack several batch elements per block (Bt,S,H) to
    # make the projection's MXU M-dim non-degenerate; for long S switch to a
    # KV-tiled online-softmax loop instead of the full [S,S] score matrix.
    return pl.pallas_call(
        functools.partial(_qkv_attention_kernel, nh=nh, dh=dh, scale=scale),
        out_shape=jax.ShapeDtypeStruct((B, S, H), jnp.bfloat16),
        grid=(B,),
        in_specs=[
            pl.BlockSpec((1, S, H), lambda b: (b, 0, 0)),
            pl.BlockSpec((H, threeH), lambda b: (0, 0), **inv),
            pl.BlockSpec((1, threeH), lambda b: (0, 0), **inv),
            pl.BlockSpec((1, 1, S), lambda b: (b, 0, 0)),
        ],
        out_specs=pl.BlockSpec((1, S, H), lambda b: (b, 0, 0)),
        scratch_shapes=[pltpu.VMEM((S, threeH), jnp.bfloat16)],
        compiler_params=_compiler_params(("parallel",)),
    )(x, wqkv, bqkv.reshape(1, threeH).astype(jnp.float32), add_mask)


# ----------------------------------------------------------------------------
# Kernel 5: fused pooler (tanh) + classifier, lane-dense (128-padded) output.
# Classifier weight/bias are pre-padded to 128 lanes at init time.
# ----------------------------------------------------------------------------
def _pool_cls_kernel(x_ref, wp_ref, bp_ref, wc_ref, bc_ref, o_ref):
    p = jnp.dot(x_ref[...], wp_ref[...], preferred_element_type=jnp.float32)
    p = jnp.tanh(p + bp_ref[...])
    y = jnp.dot(p.astype(wc_ref.dtype), wc_ref[...],
                preferred_element_type=jnp.float32)
    o_ref[...] = y + bc_ref[...]


def pallas_pool_classify(first_tok, pool_w, pool_b, cls_w_pad, cls_b_pad,
                         num_labels):
    B, H = first_tok.shape
    Np = cls_w_pad.shape[1]
    out = pl.pallas_call(
        _pool_cls_kernel,
        out_shape=jax.ShapeDtypeStruct((B, Np), jnp.float32),
        grid=(1,),
        in_specs=[
            pl.BlockSpec((B, H), lambda i: (0, 0)),
            pl.BlockSpec((H, H), lambda i: (0, 0)),
            pl.BlockSpec((1, H), lambda i: (0, 0)),
            pl.BlockSpec((H, Np), lambda i: (0, 0)),
            pl.BlockSpec((1, Np), lambda i: (0, 0)),
        ],
        out_specs=pl.BlockSpec((B, Np), lambda i: (0, 0)),
        compiler_params=_compiler_params(("arbitrary",)),
    )(first_tok, pool_w, pool_b.reshape(1, H).astype(jnp.float32),
      cls_w_pad, cls_b_pad)
    return out[:, :num_labels]


# ----------------------------------------------------------------------------
# Model (parameter setup + glue in plain JAX, hot paths in Pallas)
# ----------------------------------------------------------------------------
def init_params(key, vocab, max_pos, H, nh, inter, layers, num_labels):
    def nrm(k, shape):
        return 0.02 * jax.random.normal(k, shape, dtype=jnp.float32)

    bf = jnp.bfloat16
    keys = jax.random.split(key, 8 + layers)
    num_pad = _round_up(max(num_labels, 1), LANE)
    cls_w = nrm(keys[4], (H, num_labels)).astype(bf)
    p = {
        "word_emb": nrm(keys[0], (vocab, H)),
        "pos_emb": nrm(keys[1], (max_pos, H)),
        "type_emb": nrm(keys[2], (2, H)),
        "emb_ln_g": jnp.ones((H,), jnp.float32),
        "emb_ln_b": jnp.zeros((H,), jnp.float32),
        "pool_w": nrm(keys[3], (H, H)).astype(bf),
        "pool_b": jnp.zeros((H,), jnp.float32),
        # classifier weight/bias padded to a 128-lane-dense slab once, at init
        "cls_w_pad": jnp.zeros((H, num_pad), bf).at[:, :num_labels].set(cls_w),
        "cls_b_pad": jnp.zeros((1, num_pad), jnp.float32),
        "layers": [],
    }
    for li in range(layers):
        lk = jax.random.split(keys[8 + li], 6)
        wq, wk, wv = nrm(lk[0], (H, H)), nrm(lk[1], (H, H)), nrm(lk[2], (H, H))
        p["layers"].append({
            "wqkv": jnp.concatenate([wq, wk, wv], axis=1).astype(bf),
            "bqkv": jnp.zeros((3 * H,), jnp.float32),
            "wo": nrm(lk[3], (H, H)).astype(bf), "bo": jnp.zeros((H,), jnp.float32),
            "ln1_g": jnp.ones((H,), jnp.float32), "ln1_b": jnp.zeros((H,), jnp.float32),
            "w1": nrm(lk[4], (H, inter)).astype(bf), "b1": jnp.zeros((inter,), jnp.float32),
            "w2": nrm(lk[5], (inter, H)).astype(bf), "b2": jnp.zeros((H,), jnp.float32),
            "ln2_g": jnp.ones((H,), jnp.float32), "ln2_b": jnp.zeros((H,), jnp.float32),
        })
    return p


def basic_classifier_forward(params, tokens, mask_s, *, nh):
    B, S = tokens.shape
    H = params["word_emb"].shape[1]

    # --- embeddings (gather is XLA glue; LayerNorm is a Pallas kernel) ---
    pos_ids = jnp.arange(S, dtype=jnp.int32)
    emb = (params["word_emb"][tokens]
           + params["pos_emb"][pos_ids][None, :, :]
           + params["type_emb"][0][None, None, :])          # token_type_ids == 0
    x = pallas_layernorm(emb.reshape(B * S, H),
                         params["emb_ln_g"], params["emb_ln_b"])   # bf16 [B*S,H]

    # extended additive attention mask: (1 - mask) * -10000  -> [B,1,S]
    add_mask = ((1.0 - mask_s.astype(jnp.float32)) * -10000.0).reshape(B, 1, S)

    # --- transformer encoder layers ---
    for lp in params["layers"]:
        # fused QKV projection + attention (no HBM round trip for QKV)
        ctx = pallas_qkv_attention(x.reshape(B, S, H), lp["wqkv"], lp["bqkv"],
                                   add_mask, nh)
        # attention output projection + residual + LayerNorm (fused)
        x = pallas_linear_res_ln(ctx.reshape(B * S, H), lp["wo"], lp["bo"], x,
                                 lp["ln1_g"], lp["ln1_b"])
        # FFN: up-proj + GELU, then down-proj + residual + LayerNorm (fused)
        h1 = pallas_linear(x, lp["w1"], lp["b1"], act="gelu")
        x = pallas_linear_res_ln(h1, lp["w2"], lp["b2"], x,
                                 lp["ln2_g"], lp["ln2_b"])

    # --- pooler (tanh on first token) + classifier, fused ---
    first_tok = x.reshape(B, S, H)[:, 0, :]                         # [B, H]
    # input_dropout: identity at inference (eval mode)
    logits = pallas_pool_classify(first_tok, params["pool_w"], params["pool_b"],
                                  params["cls_w_pad"], params["cls_b_pad"],
                                  NUM_LABELS)
    return logits


if __name__ == "__main__":
    B, S, H, NH, INTER, LAYERS, VOCAB, MAX_POS = 2, 8, 32, 2, 64, 2, 50, 64

    # probe Buffered(1) support once, outside the jit trace
    _invariant_kwargs()

    key = jax.random.PRNGKey(0)
    k_par, k_tok, k_len = jax.random.split(key, 3)

    params = init_params(k_par, VOCAB, MAX_POS, H, NH, INTER, LAYERS, NUM_LABELS)

    tokens = jax.random.randint(k_tok, (B, S), 0, VOCAB, dtype=jnp.int32)
    # attention mask: first 6 / 8 tokens valid
    lens = jnp.array([6, 8], dtype=jnp.int32)
    mask_s = (jnp.arange(S)[None, :] < lens[:, None]).astype(jnp.float32)

    fwd = jax.jit(functools.partial(basic_classifier_forward, nh=NH))
    logits = jax.block_until_ready(fwd(params, tokens, mask_s))
    assert logits.shape == (B, NUM_LABELS)
    assert bool(jnp.all(jnp.isfinite(logits)))
    print("KERNEL_OK")
</pallas_src>

<mosaic_0001>
module attributes {stable_mosaic.version = 11 : i64} {
  func.func @_probe(%arg0: i32, %arg1: memref<8x128xf32, #tpu.memory_space<vmem>>, %arg2: memref<8x128xf32, #tpu.memory_space<vmem>>, %arg3: memref<8x128xf32, #tpu.memory_space<vmem>>) attributes {dimension_semantics = [#tpu.dimension_semantics<arbitrary>], iteration_bounds = array<i64: 2>, scalar_prefetch = 0 : i64, scratch_operands = 0 : i64, tpu.core_type = #tpu.core_type<tc>, window_params = [{pipeline_mode = #tpu.pipeline_mode<synchronous>, transform_indices = @transform_0, window_bounds = array<i64: 8, 128>}, {pipeline_mode = #tpu.pipeline_mode<synchronous>, transform_indices = @transform_1, window_bounds = array<i64: 8, 128>}, {pipeline_mode = #tpu.pipeline_mode<synchronous>, transform_indices = @transform_2, window_bounds = array<i64: 8, 128>}]} {
    %c0 = arith.constant 0 : index
    %c0_0 = arith.constant 0 : index
    %0 = vector.load %arg1[%c0, %c0_0] : memref<8x128xf32, #tpu.memory_space<vmem>>, vector<8x128xf32>
    %c0_1 = arith.constant 0 : index
    %c0_2 = arith.constant 0 : index
    %1 = vector.load %arg2[%c0_1, %c0_2] : memref<8x128xf32, #tpu.memory_space<vmem>>, vector<8x128xf32>
    %2 = arith.addf %0, %1 : vector<8x128xf32>
    %c0_3 = arith.constant 0 : index
    %c0_4 = arith.constant 0 : index
    %3 = vector.load %arg3[%c0_3, %c0_4] : memref<8x128xf32, #tpu.memory_space<vmem>>, vector<8x128xf32>
    tpu.vector_store %arg3[%c0_3, %c0_4], %2 {strides = array<i32>} : memref<8x128xf32, #tpu.memory_space<vmem>>, vector<8x128xf32>,
    return
  }
  func.func @transform_0(%arg0: i32) -> (i32, i32) {
    %c0_i32 = arith.constant 0 : i32
    %c0_i32_0 = arith.constant 0 : i32
    %c0_i32_1 = arith.constant 0 : i32
    return %c0_i32, %c0_i32_0 : i32, i32
  }
  func.func @transform_1(%arg0: i32) -> (i32, i32) {
    %c0_i32 = arith.constant 0 : i32
    %c0_i32_0 = arith.constant 0 : i32
    %c0_i32_1 = arith.constant 0 : i32
    return %c0_i32, %c0_i32_0 : i32, i32
  }
  func.func @transform_2(%arg0: i32) -> (i32, i32) {
    %c0_i32 = arith.constant 0 : i32
    %c0_i32_0 = arith.constant 0 : i32
    %c0_i32_1 = arith.constant 0 : i32
    return %c0_i32, %c0_i32_0 : i32, i32
  }
}

module attributes {stable_mosaic.version = 11 : i64} {
  func.func @_qkv_attention_kernel(%arg0: i32, %arg1: memref<1x8x32xbf16, #tpu.memory_space<vmem>>, %arg2: memref<32x96xbf16, #tpu.memory_space<vmem>>, %arg3: memref<1x96xf32, #tpu.memory_space<vmem>>, %arg4: memref<1x1x8xf32, #tpu.memory_space<vmem>>, %arg5: memref<1x8x32xbf16, #tpu.memory_space<vmem>>, %arg6: memref<8x96xbf16, #tpu.memory_space<vmem>>) attributes {dimension_semantics = [#tpu.dimension_semantics<parallel>], iteration_bounds = array<i64: 2>, scalar_prefetch = 0 : i64, scratch_operands = 1 : i64, tpu.core_type = #tpu.core_type<tc>, window_params = [{transform_indices = @transform_0, window_bounds = array<i64: 1, 8, 32>}, {pipeline_mode = #tpu.pipeline_mode<synchronous>, transform_indices = @transform_1, window_bounds = array<i64: 32, 96>}, {pipeline_mode = #tpu.pipeline_mode<synchronous>, transform_indices = @transform_2, window_bounds = array<i64: 1, 96>}, {transform_indices = @transform_3, window_bounds = array<i64: 1, 1, 8>}, {transform_indices = @transform_4, window_bounds = array<i64: 1, 8, 32>}]} {
    %c0 = arith.constant 0 : index
    %c0_0 = arith.constant 0 : index
    %c0_1 = arith.constant 0 : index
    %0 = vector.load %arg1[%c0, %c0_0, %c0_1] : memref<1x8x32xbf16, #tpu.memory_space<vmem>>, vector<1x8x32xbf16>
    %1 = vector.shape_cast %0 : vector<1x8x32xbf16> to vector<8x32xbf16>
    %c0_2 = arith.constant 0 : index
    %c0_3 = arith.constant 0 : index
    %2 = vector.load %arg2[%c0_2, %c0_3] : memref<32x96xbf16, #tpu.memory_space<vmem>>, vector<32x96xbf16>
    %cst = arith.constant dense<0.000000e+00> : vector<8x96xf32>
    %3 = tpu.matmul %1, %2, %cst {dimension_numbers = #tpu.dot_dimension_numbers<[1], [0], [0], [1], [0, 0, 1, 1], [], []>} : vector<8x32xbf16>, vector<32x96xbf16>, vector<8x96xf32> -> vector<8x96xf32>
    %c0_4 = arith.constant 0 : index
    %c0_5 = arith.constant 0 : index
    %4 = vector.load %arg3[%c0_4, %c0_5] : memref<1x96xf32, #tpu.memory_space<vmem>>, vector<1x96xf32>
    %5 = vector.broadcast %4 : vector<1x96xf32> to vector<8x96xf32>
    %6 = arith.addf %3, %5 : vector<8x96xf32>
    %7 = arith.truncf %6 : vector<8x96xf32> to vector<8x96xbf16>
    %c0_6 = arith.constant 0 : index
    %c0_7 = arith.constant 0 : index
    %8 = vector.load %arg6[%c0_6, %c0_7] : memref<8x96xbf16, #tpu.memory_space<vmem>>, vector<8x96xbf16>
    tpu.vector_store %arg6[%c0_6, %c0_7], %7 {strides = array<i32>} : memref<8x96xbf16, #tpu.memory_space<vmem>>, vector<8x96xbf16>,
    %c0_8 = arith.constant 0 : index
    %c0_9 = arith.constant 0 : index
    %c0_10 = arith.constant 0 : index
    %9 = vector.load %arg4[%c0_8, %c0_9, %c0_10] : memref<1x1x8xf32, #tpu.memory_space<vmem>>, vector<1x1x8xf32>
    %10 = vector.shape_cast %9 : vector<1x1x8xf32> to vector<1x8xf32>
    %c0_11 = arith.constant 0 : index
    %c0_12 = arith.constant 0 : index
    %11 = vector.load %arg6[%c0_11, %c0_12] : memref<8x96xbf16, #tpu.memory_space<vmem>>, vector<8x16xbf16>
    %c0_13 = arith.constant 0 : index
    %c32 = arith.constant 32 : index
    %12 = vector.load %arg6[%c0_13, %c32] : memref<8x96xbf16, #tpu.memory_space<vmem>>, vector<8x16xbf16>
    %c0_14 = arith.constant 0 : index
    %c64 = arith.constant 64 : index
    %13 = vector.load %arg6[%c0_14, %c64] : memref<8x96xbf16, #tpu.memory_space<vmem>>, vector<8x16xbf16>
    %cst_15 = arith.constant dense<0.000000e+00> : vector<8x8xf32>
    %14 = tpu.matmul %11, %12, %cst_15 {dimension_numbers = #tpu.dot_dimension_numbers<[1], [1], [0], [0], [0, 0, 1, 0], [], []>} : vector<8x16xbf16>, vector<8x16xbf16>, vector<8x8xf32> -> vector<8x8xf32>
    %cst_16 = arith.constant 2.500000e-01 : f32
    %15 = vector.broadcast %cst_16 : f32 to vector<8x8xf32>
    %16 = arith.mulf %14, %15 : vector<8x8xf32>
    %17 = vector.broadcast %10 : vector<1x8xf32> to vector<8x8xf32>
    %18 = arith.addf %16, %17 : vector<8x8xf32>
    %cst_17 = arith.constant dense<0xFF800000> : vector<8xf32>
    %19 = vector.multi_reduction <maximumf>, %18, %cst_17 [1] : vector<8x8xf32> to vector<8xf32>
    %20 = vector.shape_cast %19 : vector<8xf32> to vector<8x1xf32>
    %21 = vector.broadcast %20 : vector<8x1xf32> to vector<8x8xf32>
    %22 = arith.subf %18, %21 : vector<8x8xf32>
    %23 = math.exp %22 : vector<8x8xf32>
    %cst_18 = arith.constant dense<0.000000e+00> : vector<8xf32>
    %24 = vector.multi_reduction <add>, %23, %cst_18 [1] : vector<8x8xf32> to vector<8xf32>
    %25 = vector.shape_cast %24 : vector<8xf32> to vector<8x1xf32>
    %26 = tpu.reciprocal %25 {approx = true} : vector<8x1xf32> -> vector<8x1xf32>
    %27 = vector.broadcast %26 : vector<8x1xf32> to vector<8x8xf32>
    %28 = arith.mulf %23, %27 : vector<8x8xf32>
    %29 = arith.truncf %28 : vector<8x8xf32> to vector<8x8xbf16>
    %cst_19 = arith.constant dense<0.000000e+00> : vector<8x16xf32>
    %30 = tpu.matmul %29, %13, %cst_19 {dimension_numbers = #tpu.dot_dimension_numbers<[1], [0], [0], [1], [0, 0, 1, 1], [], []>} : vector<8x8xbf16>, vector<8x16xbf16>, vector<8x16xf32> -> vector<8x16xf32>
    %31 = arith.truncf %30 : vector<8x16xf32> to vector<8x16xbf16>
    %c0_20 = arith.constant 0 : index
    %c0_21 = arith.constant 0 : index
    %c0_22 = arith.constant 0 : index
    %32 = vector.load %arg5[%c0_20, %c0_21, %c0_22] : memref<1x8x32xbf16, #tpu.memory_space<vmem>>, vector<1x8x16xbf16>
    %33 = vector.shape_cast %32 : vector<1x8x16xbf16> to vector<8x16xbf16>
    %34 = vector.shape_cast %31 : vector<8x16xbf16> to vector<1x8x16xbf16>
    tpu.vector_store %arg5[%c0_20, %c0_21, %c0_22], %34 {strides = array<i32>} : memref<1x8x32xbf16, #tpu.memory_space<vmem>>, vector<1x8x16xbf16>,
    %c0_23 = arith.constant 0 : index
    %c16 = arith.constant 16 : index
    %35 = vector.load %arg6[%c0_23, %c16] : memref<8x96xbf16, #tpu.memory_space<vmem>>, vector<8x16xbf16>
    %c0_24 = arith.constant 0 : index
    %c48 = arith.constant 48 : index
    %36 = vector.load %arg6[%c0_24, %c48] : memref<8x96xbf16, #tpu.memory_space<vmem>>, vector<8x16xbf16>
    %c0_25 = arith.constant 0 : index
    %c80 = arith.constant 80 : index
    %37 = vector.load %arg6[%c0_25, %c80] : memref<8x96xbf16, #tpu.memory_space<vmem>>, vector<8x16xbf16>
    %cst_26 = arith.constant dense<0.000000e+00> : vector<8x8xf32>
    %38 = tpu.matmul %35, %36, %cst_26 {dimension_numbers = #tpu.dot_dimension_numbers<[1], [1], [0], [0], [0, 0, 1, 0], [], []>} : vector<8x16xbf16>, vector<8x16xbf16>, vector<8x8xf32> -> vector<8x8xf32>
    %cst_27 = arith.constant 2.500000e-01 : f32
    %39 = vector.broadcast %cst_27 : f32 to vector<8x8xf32>
    %40 = arith.mulf %38, %39 : vector<8x8xf32>
    %41 = vector.broadcast %10 : vector<1x8xf32> to vector<8x8xf32>
    %42 = arith.addf %40, %41 : vector<8x8xf32>
    %cst_28 = arith.constant dense<0xFF800000> : vector<8xf32>
    %43 = vector.multi_reduction <maximumf>, %42, %cst_28 [1] : vector<8x8xf32> to vector<8xf32>
    %44 = vector.shape_cast %43 : vector<8xf32> to vector<8x1xf32>
    %45 = vector.broadcast %44 : vector<8x1xf32> to vector<8x8xf32>
    %46 = arith.subf %42, %45 : vector<8x8xf32>
    %47 = math.exp %46 : vector<8x8xf32>
    %cst_29 = arith.constant dense<0.000000e+00> : vector<8xf32>
    %48 = vector.multi_reduction <add>, %47, %cst_29 [1] : vector<8x8xf32> to vector<8xf32>
    %49 = vector.shape_cast %48 : vector<8xf32> to vector<8x1xf32>
    %50 = tpu.reciprocal %49 {approx = true} : vector<8x1xf32> -> vector<8x1xf32>
    %51 = vector.broadcast %50 : vector<8x1xf32> to vector<8x8xf32>
    %52 = arith.mulf %47, %51 : vector<8x8xf32>
    %53 = arith.truncf %52 : vector<8x8xf32> to vector<8x8xbf16>
    %cst_30 = arith.constant dense<0.000000e+00> : vector<8x16xf32>
    %54 = tpu.matmul %53, %37, %cst_30 {dimension_numbers = #tpu.dot_dimension_numbers<[1], [0], [0], [1], [0, 0, 1, 1], [], []>} : vector<8x8xbf16>, vector<8x16xbf16>, vector<8x16xf32> -> vector<8x16xf32>
    %55 = arith.truncf %54 : vector<8x16xf32> to vector<8x16xbf16>
    %c0_31 = arith.constant 0 : index
    %c0_32 = arith.constant 0 : index
    %c16_33 = arith.constant 16 : index
    %56 = vector.load %arg5[%c0_31, %c0_32, %c16_33] : memref<1x8x32xbf16, #tpu.memory_space<vmem>>, vector<1x8x16xbf16>
    %57 = vector.shape_cast %56 : vector<1x8x16xbf16> to vector<8x16xbf16>
    %58 = vector.shape_cast %55 : vector<8x16xbf16> to vector<1x8x16xbf16>
    tpu.vector_store %arg5[%c0_31, %c0_32, %c16_33], %58 {strides = array<i32>} : memref<1x8x32xbf16, #tpu.memory_space<vmem>>, vector<1x8x16xbf16>,
    return
  }
  func.func @transform_0(%arg0: i32) -> (i32, i32, i32) {
    %c0_i32 = arith.constant 0 : i32
    %c0_i32_0 = arith.constant 0 : i32
    %c0_i32_1 = arith.constant 0 : i32
    return %arg0, %c0_i32, %c0_i32_0 : i32, i32, i32
  }
  func.func @transform_1(%arg0: i32) -> (i32, i32) {
    %c0_i32 = arith.constant 0 : i32
    %c0_i32_0 = arith.constant 0 : i32
    %c0_i32_1 = arith.constant 0 : i32
    return %c0_i32, %c0_i32_0 : i32, i32
  }
  func.func @transform_2(%arg0: i32) -> (i32, i32) {
    %c0_i32 = arith.constant 0 : i32
    %c0_i32_0 = arith.constant 0 : i32
    %c0_i32_1 = arith.constant 0 : i32
    return %c0_i32, %c0_i32_0 : i32, i32
  }
  func.func @transform_3(%arg0: i32) -> (i32, i32, i32) {
    %c0_i32 = arith.constant 0 : i32
    %c0_i32_0 = arith.constant 0 : i32
    %c0_i32_1 = arith.constant 0 : i32
    return %arg0, %c0_i32, %c0_i32_0 : i32, i32, i32
  }
  func.func @transform_4(%arg0: i32) -> (i32, i32, i32) {
    %c0_i32 = arith.constant 0 : i32
    %c0_i32_0 = arith.constant 0 : i32
    %c0_i32_1 = arith.constant 0 : i32
    return %arg0, %c0_i32, %c0_i32_0 : i32, i32, i32
  }
}

module attributes {stable_mosaic.version = 11 : i64} {
  func.func @_ln_kernel(%arg0: i32, %arg1: memref<16x32xf32, #tpu.memory_space<vmem>>, %arg2: memref<1x32xf32, #tpu.memory_space<vmem>>, %arg3: memref<1x32xf32, #tpu.memory_space<vmem>>, %arg4: memref<16x32xbf16, #tpu.memory_space<vmem>>) attributes {dimension_semantics = [#tpu.dimension_semantics<parallel>], iteration_bounds = array<i64: 1>, scalar_prefetch = 0 : i64, scratch_operands = 0 : i64, tpu.core_type = #tpu.core_type<tc>, window_params = [{transform_indices = @transform_0, window_bounds = array<i64: 16, 32>}, {pipeline_mode = #tpu.pipeline_mode<synchronous>, transform_indices = @transform_1, window_bounds = array<i64: 1, 32>}, {pipeline_mode = #tpu.pipeline_mode<synchronous>, transform_indices = @transform_2, window_bounds = array<i64: 1, 32>}, {transform_indices = @transform_3, window_bounds = array<i64: 16, 32>}]} {
    %c0 = arith.constant 0 : index
    %c0_0 = arith.constant 0 : index
    %0 = vector.load %arg1[%c0, %c0_0] : memref<16x32xf32, #tpu.memory_space<vmem>>, vector<16x32xf32>
    %cst = arith.constant dense<0.000000e+00> : vector<16xf32>
    %1 = vector.multi_reduction <add>, %0, %cst [1] : vector<16x32xf32> to vector<16xf32>
    %2 = vector.shape_cast %1 : vector<16xf32> to vector<16x1xf32>
    %cst_1 = arith.constant 3.200000e+01 : f32
    %3 = vector.broadcast %cst_1 : f32 to vector<16x1xf32>
    %4 = arith.divf %2, %3 : vector<16x1xf32>
    %5 = vector.broadcast %4 : vector<16x1xf32> to vector<16x32xf32>
    %6 = arith.subf %0, %5 : vector<16x32xf32>
    %7 = vector.broadcast %4 : vector<16x1xf32> to vector<16x32xf32>
    %8 = arith.subf %0, %7 : vector<16x32xf32>
    %9 = arith.mulf %6, %8 : vector<16x32xf32>
    %cst_2 = arith.constant dense<0.000000e+00> : vector<16xf32>
    %10 = vector.multi_reduction <add>, %9, %cst_2 [1] : vector<16x32xf32> to vector<16xf32>
    %11 = vector.shape_cast %10 : vector<16xf32> to vector<16x1xf32>
    %cst_3 = arith.constant 3.200000e+01 : f32
    %12 = vector.broadcast %cst_3 : f32 to vector<16x1xf32>
    %13 = arith.divf %11, %12 : vector<16x1xf32>
    %cst_4 = arith.constant 9.99999996E-13 : f32
    %14 = vector.broadcast %cst_4 : f32 to vector<16x1xf32>
    %15 = arith.addf %13, %14 : vector<16x1xf32>
    %16 = math.rsqrt %15 : vector<16x1xf32>
    %17 = vector.broadcast %4 : vector<16x1xf32> to vector<16x32xf32>
    %18 = arith.subf %0, %17 : vector<16x32xf32>
    %19 = vector.broadcast %16 : vector<16x1xf32> to vector<16x32xf32>
    %20 = arith.mulf %18, %19 : vector<16x32xf32>
    %c0_5 = arith.constant 0 : index
    %c0_6 = arith.constant 0 : index
    %21 = vector.load %arg2[%c0_5, %c0_6] : memref<1x32xf32, #tpu.memory_space<vmem>>, vector<1x32xf32>
    %22 = vector.broadcast %21 : vector<1x32xf32> to vector<16x32xf32>
    %23 = arith.mulf %20, %22 : vector<16x32xf32>
    %c0_7 = arith.constant 0 : index
    %c0_8 = arith.constant 0 : index
    %24 = vector.load %arg3[%c0_7, %c0_8] : memref<1x32xf32, #tpu.memory_space<vmem>>, vector<1x32xf32>
    %25 = vector.broadcast %24 : vector<1x32xf32> to vector<16x32xf32>
    %26 = arith.addf %23, %25 : vector<16x32xf32>
    %27 = arith.truncf %26 : vector<16x32xf32> to vector<16x32xbf16>
    %c0_9 = arith.constant 0 : index
    %c0_10 = arith.constant 0 : index
    %28 = vector.load %arg4[%c0_9, %c0_10] : memref<16x32xbf16, #tpu.memory_space<vmem>>, vector<16x32xbf16>
    tpu.vector_store %arg4[%c0_9, %c0_10], %27 {strides = array<i32>} : memref<16x32xbf16, #tpu.memory_space<vmem>>, vector<16x32xbf16>,
    return
  }
  func.func @transform_0(%arg0: i32) -> (i32, i32) {
    %c0_i32 = arith.constant 0 : i32
    %c0_i32_0 = arith.constant 0 : i32
    return %arg0, %c0_i32 : i32, i32
  }
  func.func @transform_1(%arg0: i32) -> (i32, i32) {
    %c0_i32 = arith.constant 0 : i32
    %c0_i32_0 = arith.constant 0 : i32
    %c0_i32_1 = arith.constant 0 : i32
    return %c0_i32, %c0_i32_0 : i32, i32
  }
  func.func @transform_2(%arg0: i32) -> (i32, i32) {
    %c0_i32 = arith.constant 0 : i32
    %c0_i32_0 = arith.constant 0 : i32
    %c0_i32_1 = arith.constant 0 : i32
    return %c0_i32, %c0_i32_0 : i32, i32
  }
  func.func @transform_3(%arg0: i32) -> (i32, i32) {
    %c0_i32 = arith.constant 0 : i32
    %c0_i32_0 = arith.constant 0 : i32
    return %arg0, %c0_i32 : i32, i32
  }
}

module attributes {stable_mosaic.version = 11 : i64} {
  func.func @_linear_kernel(%arg0: i32, %arg1: i32, %arg2: memref<16x32xbf16, #tpu.memory_space<vmem>>, %arg3: memref<32x64xbf16, #tpu.memory_space<vmem>>, %arg4: memref<1x64xf32, #tpu.memory_space<vmem>>, %arg5: memref<16x64xbf16, #tpu.memory_space<vmem>>) attributes {dimension_semantics = [#tpu.dimension_semantics<parallel>, #tpu.dimension_semantics<parallel>], iteration_bounds = array<i64: 1, 1>, scalar_prefetch = 0 : i64, scratch_operands = 0 : i64, tpu.core_type = #tpu.core_type<tc>, window_params = [{transform_indices = @transform_0, window_bounds = array<i64: 16, 32>}, {transform_indices = @transform_1, window_bounds = array<i64: 32, 64>}, {transform_indices = @transform_2, window_bounds = array<i64: 1, 64>}, {transform_indices = @transform_3, window_bounds = array<i64: 16, 64>}]} {
    %c0 = arith.constant 0 : index
    %c0_0 = arith.constant 0 : index
    %0 = vector.load %arg2[%c0, %c0_0] : memref<16x32xbf16, #tpu.memory_space<vmem>>, vector<16x32xbf16>
    %c0_1 = arith.constant 0 : index
    %c0_2 = arith.constant 0 : index
    %1 = vector.load %arg3[%c0_1, %c0_2] : memref<32x64xbf16, #tpu.memory_space<vmem>>, vector<32x64xbf16>
    %cst = arith.constant dense<0.000000e+00> : vector<16x64xf32>
    %2 = tpu.matmul %0, %1, %cst {dimension_numbers = #tpu.dot_dimension_numbers<[1], [0], [0], [1], [0, 0, 1, 1], [], []>} : vector<16x32xbf16>, vector<32x64xbf16>, vector<16x64xf32> -> vector<16x64xf32>
    %c0_3 = arith.constant 0 : index
    %c0_4 = arith.constant 0 : index
    %3 = vector.load %arg4[%c0_3, %c0_4] : memref<1x64xf32, #tpu.memory_space<vmem>>, vector<1x64xf32>
    %4 = vector.broadcast %3 : vector<1x64xf32> to vector<16x64xf32>
    %5 = arith.addf %2, %4 : vector<16x64xf32>
    %6 = arith.truncf %5 : vector<16x64xf32> to vector<16x64xbf16>
    %cst_5 = arith.constant 5.000000e-01 : bf16
    %7 = vector.broadcast %cst_5 : bf16 to vector<16x64xbf16>
    %8 = arith.mulf %7, %6 : vector<16x64xbf16>
    %cst_6 = arith.constant 4.467770e-02 : bf16
    %9 = vector.broadcast %cst_6 : bf16 to vector<16x64xbf16>
    %10 = arith.mulf %9, %6 : vector<16x64xbf16>
    %11 = arith.mulf %10, %6 : vector<16x64xbf16>
    %12 = arith.mulf %11, %6 : vector<16x64xbf16>
    %13 = arith.addf %6, %12 : vector<16x64xbf16>
    %cst_7 = arith.constant 7.968750e-01 : bf16
    %14 = vector.broadcast %cst_7 : bf16 to vector<16x64xbf16>
    %15 = arith.mulf %14, %13 : vector<16x64xbf16>
    %16 = math.tanh %15 : vector<16x64xbf16>
    %cst_8 = arith.constant 1.000000e+00 : bf16
    %17 = vector.broadcast %cst_8 : bf16 to vector<16x64xbf16>
    %18 = arith.addf %17, %16 : vector<16x64xbf16>
    %19 = arith.mulf %8, %18 : vector<16x64xbf16>
    %c0_9 = arith.constant 0 : index
    %c0_10 = arith.constant 0 : index
    %20 = vector.load %arg5[%c0_9, %c0_10] : memref<16x64xbf16, #tpu.memory_space<vmem>>, vector<16x64xbf16>
    tpu.vector_store %arg5[%c0_9, %c0_10], %19 {strides = array<i32>} : memref<16x64xbf16, #tpu.memory_space<vmem>>, vector<16x64xbf16>,
    return
  }
  func.func @transform_0(%arg0: i32, %arg1: i32) -> (i32, i32) {
    %c0_i32 = arith.constant 0 : i32
    %c0_i32_0 = arith.constant 0 : i32
    return %arg0, %c0_i32 : i32, i32
  }
  func.func @transform_1(%arg0: i32, %arg1: i32) -> (i32, i32) {
    %c0_i32 = arith.constant 0 : i32
    %c0_i32_0 = arith.constant 0 : i32
    return %c0_i32, %arg1 : i32, i32
  }
  func.func @transform_2(%arg0: i32, %arg1: i32) -> (i32, i32) {
    %c0_i32 = arith.constant 0 : i32
    %c0_i32_0 = arith.constant 0 : i32
    return %c0_i32, %arg1 : i32, i32
  }
  func.func @transform_3(%arg0: i32, %arg1: i32) -> (i32, i32) {
    %c0_i32 = arith.constant 0 : i32
    return %arg0, %arg1 : i32, i32
  }
}

module attributes {stable_mosaic.version = 11 : i64} {
  func.func @_linear_res_ln_kernel(%arg0: i32, %arg1: memref<16x32xbf16, #tpu.memory_space<vmem>>, %arg2: memref<32x32xbf16, #tpu.memory_space<vmem>>, %arg3: memref<1x32xf32, #tpu.memory_space<vmem>>, %arg4: memref<16x32xbf16, #tpu.memory_space<vmem>>, %arg5: memref<1x32xf32, #tpu.memory_space<vmem>>, %arg6: memref<1x32xf32, #tpu.memory_space<vmem>>, %arg7: memref<16x32xbf16, #tpu.memory_space<vmem>>) attributes {dimension_semantics = [#tpu.dimension_semantics<parallel>], iteration_bounds = array<i64: 1>, scalar_prefetch = 0 : i64, scratch_operands = 0 : i64, tpu.core_type = #tpu.core_type<tc>, window_params = [{transform_indices = @transform_0, window_bounds = array<i64: 16, 32>}, {pipeline_mode = #tpu.pipeline_mode<synchronous>, transform_indices = @transform_1, window_bounds = array<i64: 32, 32>}, {pipeline_mode = #tpu.pipeline_mode<synchronous>, transform_indices = @transform_2, window_bounds = array<i64: 1, 32>}, {transform_indices = @transform_3, window_bounds = array<i64: 16, 32>}, {pipeline_mode = #tpu.pipeline_mode<synchronous>, transform_indices = @transform_4, window_bounds = array<i64: 1, 32>}, {pipeline_mode = #tpu.pipeline_mode<synchronous>, transform_indices = @transform_5, window_bounds = array<i64: 1, 32>}, {transform_indices = @transform_6, window_bounds = array<i64: 16, 32>}]} {
    %c0 = arith.constant 0 : index
    %c0_0 = arith.constant 0 : index
    %0 = vector.load %arg1[%c0, %c0_0] : memref<16x32xbf16, #tpu.memory_space<vmem>>, vector<16x32xbf16>
    %c0_1 = arith.constant 0 : index
    %c0_2 = arith.constant 0 : index
    %1 = vector.load %arg2[%c0_1, %c0_2] : memref<32x32xbf16, #tpu.memory_space<vmem>>, vector<32x32xbf16>
    %cst = arith.constant dense<0.000000e+00> : vector<16x32xf32>
    %2 = tpu.matmul %0, %1, %cst {dimension_numbers = #tpu.dot_dimension_numbers<[1], [0], [0], [1], [0, 0, 1, 1], [], []>} : vector<16x32xbf16>, vector<32x32xbf16>, vector<16x32xf32> -> vector<16x32xf32>
    %c0_3 = arith.constant 0 : index
    %c0_4 = arith.constant 0 : index
    %3 = vector.load %arg3[%c0_3, %c0_4] : memref<1x32xf32, #tpu.memory_space<vmem>>, vector<1x32xf32>
    %4 = vector.broadcast %3 : vector<1x32xf32> to vector<16x32xf32>
    %5 = arith.addf %2, %4 : vector<16x32xf32>
    %c0_5 = arith.constant 0 : index
    %c0_6 = arith.constant 0 : index
    %6 = vector.load %arg4[%c0_5, %c0_6] : memref<16x32xbf16, #tpu.memory_space<vmem>>, vector<16x32xbf16>
    %7 = arith.extf %6 : vector<16x32xbf16> to vector<16x32xf32>
    %8 = arith.addf %5, %7 : vector<16x32xf32>
    %cst_7 = arith.constant dense<0.000000e+00> : vector<16xf32>
    %9 = vector.multi_reduction <add>, %8, %cst_7 [1] : vector<16x32xf32> to vector<16xf32>
    %10 = vector.shape_cast %9 : vector<16xf32> to vector<16x1xf32>
    %cst_8 = arith.constant 3.200000e+01 : f32
    %11 = vector.broadcast %cst_8 : f32 to vector<16x1xf32>
    %12 = arith.divf %10, %11 : vector<16x1xf32>
    %13 = vector.broadcast %12 : vector<16x1xf32> to vector<16x32xf32>
    %14 = arith.subf %8, %13 : vector<16x32xf32>
    %15 = vector.broadcast %12 : vector<16x1xf32> to vector<16x32xf32>
    %16 = arith.subf %8, %15 : vector<16x32xf32>
    %17 = arith.mulf %14, %16 : vector<16x32xf32>
    %cst_9 = arith.constant dense<0.000000e+00> : vector<16xf32>
    %18 = vector.multi_reduction <add>, %17, %cst_9 [1] : vector<16x32xf32> to vector<16xf32>
    %19 = vector.shape_cast %18 : vector<16xf32> to vector<16x1xf32>
    %cst_10 = arith.constant 3.200000e+01 : f32
    %20 = vector.broadcast %cst_10 : f32 to vector<16x1xf32>
    %21 = arith.divf %19, %20 : vector<16x1xf32>
    %cst_11 = arith.constant 9.99999996E-13 : f32
    %22 = vector.broadcast %cst_11 : f32 to vector<16x1xf32>
    %23 = arith.addf %21, %22 : vector<16x1xf32>
    %24 = math.rsqrt %23 : vector<16x1xf32>
    %25 = vector.broadcast %12 : vector<16x1xf32> to vector<16x32xf32>
    %26 = arith.subf %8, %25 : vector<16x32xf32>
    %27 = vector.broadcast %24 : vector<16x1xf32> to vector<16x32xf32>
    %28 = arith.mulf %26, %27 : vector<16x32xf32>
    %c0_12 = arith.constant 0 : index
    %c0_13 = arith.constant 0 : index
    %29 = vector.load %arg5[%c0_12, %c0_13] : memref<1x32xf32, #tpu.memory_space<vmem>>, vector<1x32xf32>
    %30 = vector.broadcast %29 : vector<1x32xf32> to vector<16x32xf32>
    %31 = arith.mulf %28, %30 : vector<16x32xf32>
    %c0_14 = arith.constant 0 : index
    %c0_15 = arith.constant 0 : index
    %32 = vector.load %arg6[%c0_14, %c0_15] : memref<1x32xf32, #tpu.memory_space<vmem>>, vector<1x32xf32>
    %33 = vector.broadcast %32 : vector<1x32xf32> to vector<16x32xf32>
    %34 = arith.addf %31, %33 : vector<16x32xf32>
    %35 = arith.truncf %34 : vector<16x32xf32> to vector<16x32xbf16>
    %c0_16 = arith.constant 0 : index
    %c0_17 = arith.constant 0 : index
    %36 = vector.load %arg7[%c0_16, %c0_17] : memref<16x32xbf16, #tpu.memory_space<vmem>>, vector<16x32xbf16>
    tpu.vector_store %arg7[%c0_16, %c0_17], %35 {strides = array<i32>} : memref<16x32xbf16, #tpu.memory_space<vmem>>, vector<16x32xbf16>,
    return
  }
  func.func @transform_0(%arg0: i32) -> (i32, i32) {
    %c0_i32 = arith.constant 0 : i32
    %c0_i32_0 = arith.constant 0 : i32
    return %arg0, %c0_i32 : i32, i32
  }
  func.func @transform_1(%arg0: i32) -> (i32, i32) {
    %c0_i32 = arith.constant 0 : i32
    %c0_i32_0 = arith.constant 0 : i32
    %c0_i32_1 = arith.constant 0 : i32
    return %c0_i32, %c0_i32_0 : i32, i32
  }
  func.func @transform_2(%arg0: i32) -> (i32, i32) {
    %c0_i32 = arith.constant 0 : i32
    %c0_i32_0 = arith.constant 0 : i32
    %c0_i32_1 = arith.constant 0 : i32
    return %c0_i32, %c0_i32_0 : i32, i32
  }
  func.func @transform_3(%arg0: i32) -> (i32, i32) {
    %c0_i32 = arith.constant 0 : i32
    %c0_i32_0 = arith.constant 0 : i32
    return %arg0, %c0_i32 : i32, i32
  }
  func.func @transform_4(%arg0: i32) -> (i32, i32) {
    %c0_i32 = arith.constant 0 : i32
    %c0_i32_0 = arith.constant 0 : i32
    %c0_i32_1 = arith.constant 0 : i32
    return %c0_i32, %c0_i32_0 : i32, i32
  }
  func.func @transform_5(%arg0: i32) -> (i32, i32) {
    %c0_i32 = arith.constant 0 : i32
    %c0_i32_0 = arith.constant 0 : i32
    %c0_i32_1 = arith.constant 0 : i32
    return %c0_i32, %c0_i32_0 : i32, i32
  }
  func.func @transform_6(%arg0: i32) -> (i32, i32) {
    %c0_i32 = arith.constant 0 : i32
    %c0_i32_0 = arith.constant 0 : i32
    return %arg0, %c0_i32 : i32, i32
  }
}

module attributes {stable_mosaic.version = 11 : i64} {
  func.func @_linear_res_ln_kernel(%arg0: i32, %arg1: memref<16x64xbf16, #tpu.memory_space<vmem>>, %arg2: memref<64x32xbf16, #tpu.memory_space<vmem>>, %arg3: memref<1x32xf32, #tpu.memory_space<vmem>>, %arg4: memref<16x32xbf16, #tpu.memory_space<vmem>>, %arg5: memref<1x32xf32, #tpu.memory_space<vmem>>, %arg6: memref<1x32xf32, #tpu.memory_space<vmem>>, %arg7: memref<16x32xbf16, #tpu.memory_space<vmem>>) attributes {dimension_semantics = [#tpu.dimension_semantics<parallel>], iteration_bounds = array<i64: 1>, scalar_prefetch = 0 : i64, scratch_operands = 0 : i64, tpu.core_type = #tpu.core_type<tc>, window_params = [{transform_indices = @transform_0, window_bounds = array<i64: 16, 64>}, {pipeline_mode = #tpu.pipeline_mode<synchronous>, transform_indices = @transform_1, window_bounds = array<i64: 64, 32>}, {pipeline_mode = #tpu.pipeline_mode<synchronous>, transform_indices = @transform_2, window_bounds = array<i64: 1, 32>}, {transform_indices = @transform_3, window_bounds = array<i64: 16, 32>}, {pipeline_mode = #tpu.pipeline_mode<synchronous>, transform_indices = @transform_4, window_bounds = array<i64: 1, 32>}, {pipeline_mode = #tpu.pipeline_mode<synchronous>, transform_indices = @transform_5, window_bounds = array<i64: 1, 32>}, {transform_indices = @transform_6, window_bounds = array<i64: 16, 32>}]} {
    %c0 = arith.constant 0 : index
    %c0_0 = arith.constant 0 : index
    %0 = vector.load %arg1[%c0, %c0_0] : memref<16x64xbf16, #tpu.memory_space<vmem>>, vector<16x64xbf16>
    %c0_1 = arith.constant 0 : index
    %c0_2 = arith.constant 0 : index
    %1 = vector.load %arg2[%c0_1, %c0_2] : memref<64x32xbf16, #tpu.memory_space<vmem>>, vector<64x32xbf16>
    %cst = arith.constant dense<0.000000e+00> : vector<16x32xf32>
    %2 = tpu.matmul %0, %1, %cst {dimension_numbers = #tpu.dot_dimension_numbers<[1], [0], [0], [1], [0, 0, 1, 1], [], []>} : vector<16x64xbf16>, vector<64x32xbf16>, vector<16x32xf32> -> vector<16x32xf32>
    %c0_3 = arith.constant 0 : index
    %c0_4 = arith.constant 0 : index
    %3 = vector.load %arg3[%c0_3, %c0_4] : memref<1x32xf32, #tpu.memory_space<vmem>>, vector<1x32xf32>
    %4 = vector.broadcast %3 : vector<1x32xf32> to vector<16x32xf32>
    %5 = arith.addf %2, %4 : vector<16x32xf32>
    %c0_5 = arith.constant 0 : index
    %c0_6 = arith.constant 0 : index
    %6 = vector.load %arg4[%c0_5, %c0_6] : memref<16x32xbf16, #tpu.memory_space<vmem>>, vector<16x32xbf16>
    %7 = arith.extf %6 : vector<16x32xbf16> to vector<16x32xf32>
    %8 = arith.addf %5, %7 : vector<16x32xf32>
    %cst_7 = arith.constant dense<0.000000e+00> : vector<16xf32>
    %9 = vector.multi_reduction <add>, %8, %cst_7 [1] : vector<16x32xf32> to vector<16xf32>
    %10 = vector.shape_cast %9 : vector<16xf32> to vector<16x1xf32>
    %cst_8 = arith.constant 3.200000e+01 : f32
    %11 = vector.broadcast %cst_8 : f32 to vector<16x1xf32>
    %12 = arith.divf %10, %11 : vector<16x1xf32>
    %13 = vector.broadcast %12 : vector<16x1xf32> to vector<16x32xf32>
    %14 = arith.subf %8, %13 : vector<16x32xf32>
    %15 = vector.broadcast %12 : vector<16x1xf32> to vector<16x32xf32>
    %16 = arith.subf %8, %15 : vector<16x32xf32>
    %17 = arith.mulf %14, %16 : vector<16x32xf32>
    %cst_9 = arith.constant dense<0.000000e+00> : vector<16xf32>
    %18 = vector.multi_reduction <add>, %17, %cst_9 [1] : vector<16x32xf32> to vector<16xf32>
    %19 = vector.shape_cast %18 : vector<16xf32> to vector<16x1xf32>
    %cst_10 = arith.constant 3.200000e+01 : f32
    %20 = vector.broadcast %cst_10 : f32 to vector<16x1xf32>
    %21 = arith.divf %19, %20 : vector<16x1xf32>
    %cst_11 = arith.constant 9.99999996E-13 : f32
    %22 = vector.broadcast %cst_11 : f32 to vector<16x1xf32>
    %23 = arith.addf %21, %22 : vector<16x1xf32>
    %24 = math.rsqrt %23 : vector<16x1xf32>
    %25 = vector.broadcast %12 : vector<16x1xf32> to vector<16x32xf32>
    %26 = arith.subf %8, %25 : vector<16x32xf32>
    %27 = vector.broadcast %24 : vector<16x1xf32> to vector<16x32xf32>
    %28 = arith.mulf %26, %27 : vector<16x32xf32>
    %c0_12 = arith.constant 0 : index
    %c0_13 = arith.constant 0 : index
    %29 = vector.load %arg5[%c0_12, %c0_13] : memref<1x32xf32, #tpu.memory_space<vmem>>, vector<1x32xf32>
    %30 = vector.broadcast %29 : vector<1x32xf32> to vector<16x32xf32>
    %31 = arith.mulf %28, %30 : vector<16x32xf32>
    %c0_14 = arith.constant 0 : index
    %c0_15 = arith.constant 0 : index
    %32 = vector.load %arg6[%c0_14, %c0_15] : memref<1x32xf32, #tpu.memory_space<vmem>>, vector<1x32xf32>
    %33 = vector.broadcast %32 : vector<1x32xf32> to vector<16x32xf32>
    %34 = arith.addf %31, %33 : vector<16x32xf32>
    %35 = arith.truncf %34 : vector<16x32xf32> to vector<16x32xbf16>
    %c0_16 = arith.constant 0 : index
    %c0_17 = arith.constant 0 : index
    %36 = vector.load %arg7[%c0_16, %c0_17] : memref<16x32xbf16, #tpu.memory_space<vmem>>, vector<16x32xbf16>
    tpu.vector_store %arg7[%c0_16, %c0_17], %35 {strides = array<i32>} : memref<16x32xbf16, #tpu.memory_space<vmem>>, vector<16x32xbf16>,
    return
  }
  func.func @transform_0(%arg0: i32) -> (i32, i32) {
    %c0_i32 = arith.constant 0 : i32
    %c0_i32_0 = arith.constant 0 : i32
    return %arg0, %c0_i32 : i32, i32
  }
  func.func @transform_1(%arg0: i32) -> (i32, i32) {
    %c0_i32 = arith.constant 0 : i32
    %c0_i32_0 = arith.constant 0 : i32
    %c0_i32_1 = arith.constant 0 : i32
    return %c0_i32, %c0_i32_0 : i32, i32
  }
  func.func @transform_2(%arg0: i32) -> (i32, i32) {
    %c0_i32 = arith.constant 0 : i32
    %c0_i32_0 = arith.constant 0 : i32
    %c0_i32_1 = arith.constant 0 : i32
    return %c0_i32, %c0_i32_0 : i32, i32
  }
  func.func @transform_3(%arg0: i32) -> (i32, i32) {
    %c0_i32 = arith.constant 0 : i32
    %c0_i32_0 = arith.constant 0 : i32
    return %arg0, %c0_i32 : i32, i32
  }
  func.func @transform_4(%arg0: i32) -> (i32, i32) {
    %c0_i32 = arith.constant 0 : i32
    %c0_i32_0 = arith.constant 0 : i32
    %c0_i32_1 = arith.constant 0 : i32
    return %c0_i32, %c0_i32_0 : i32, i32
  }
  func.func @transform_5(%arg0: i32) -> (i32, i32) {
    %c0_i32 = arith.constant 0 : i32
    %c0_i32_0 = arith.constant 0 : i32
    %c0_i32_1 = arith.constant 0 : i32
    return %c0_i32, %c0_i32_0 : i32, i32
  }
  func.func @transform_6(%arg0: i32) -> (i32, i32) {
    %c0_i32 = arith.constant 0 : i32
    %c0_i32_0 = arith.constant 0 : i32
    return %arg0, %c0_i32 : i32, i32
  }
}

module attributes {stable_mosaic.version = 11 : i64} {
  func.func @_pool_cls_kernel(%arg0: i32, %arg1: memref<2x32xbf16, #tpu.memory_space<vmem>>, %arg2: memref<32x32xbf16, #tpu.memory_space<vmem>>, %arg3: memref<1x32xf32, #tpu.memory_space<vmem>>, %arg4: memref<32x128xbf16, #tpu.memory_space<vmem>>, %arg5: memref<1x128xf32, #tpu.memory_space<vmem>>, %arg6: memref<2x128xf32, #tpu.memory_space<vmem>>) attributes {dimension_semantics = [#tpu.dimension_semantics<arbitrary>], iteration_bounds = array<i64: 1>, scalar_prefetch = 0 : i64, scratch_operands = 0 : i64, tpu.core_type = #tpu.core_type<tc>, window_params = [{pipeline_mode = #tpu.pipeline_mode<synchronous>, transform_indices = @transform_0, window_bounds = array<i64: 2, 32>}, {pipeline_mode = #tpu.pipeline_mode<synchronous>, transform_indices = @transform_1, window_bounds = array<i64: 32, 32>}, {pipeline_mode = #tpu.pipeline_mode<synchronous>, transform_indices = @transform_2, window_bounds = array<i64: 1, 32>}, {pipeline_mode = #tpu.pipeline_mode<synchronous>, transform_indices = @transform_3, window_bounds = array<i64: 32, 128>}, {pipeline_mode = #tpu.pipeline_mode<synchronous>, transform_indices = @transform_4, window_bounds = array<i64: 1, 128>}, {pipeline_mode = #tpu.pipeline_mode<synchronous>, transform_indices = @transform_5, window_bounds = array<i64: 2, 128>}]} {
    %c0 = arith.constant 0 : index
    %c0_0 = arith.constant 0 : index
    %0 = vector.load %arg1[%c0, %c0_0] : memref<2x32xbf16, #tpu.memory_space<vmem>>, vector<2x32xbf16>
    %c0_1 = arith.constant 0 : index
    %c0_2 = arith.constant 0 : index
    %1 = vector.load %arg2[%c0_1, %c0_2] : memref<32x32xbf16, #tpu.memory_space<vmem>>, vector<32x32xbf16>
    %cst = arith.constant dense<0.000000e+00> : vector<2x32xf32>
    %2 = tpu.matmul %0, %1, %cst {dimension_numbers = #tpu.dot_dimension_numbers<[1], [0], [0], [1], [0, 0, 1, 1], [], []>} : vector<2x32xbf16>, vector<32x32xbf16>, vector<2x32xf32> -> vector<2x32xf32>
    %c0_3 = arith.constant 0 : index
    %c0_4 = arith.constant 0 : index
    %3 = vector.load %arg3[%c0_3, %c0_4] : memref<1x32xf32, #tpu.memory_space<vmem>>, vector<1x32xf32>
    %4 = vector.broadcast %3 : vector<1x32xf32> to vector<2x32xf32>
    %5 = arith.addf %2, %4 : vector<2x32xf32>
    %6 = math.tanh %5 : vector<2x32xf32>
    %7 = arith.truncf %6 : vector<2x32xf32> to vector<2x32xbf16>
    %c0_5 = arith.constant 0 : index
    %c0_6 = arith.constant 0 : index
    %8 = vector.load %arg4[%c0_5, %c0_6] : memref<32x128xbf16, #tpu.memory_space<vmem>>, vector<32x128xbf16>
    %cst_7 = arith.constant dense<0.000000e+00> : vector<2x128xf32>
    %9 = tpu.matmul %7, %8, %cst_7 {dimension_numbers = #tpu.dot_dimension_numbers<[1], [0], [0], [1], [0, 0, 1, 1], [], []>} : vector<2x32xbf16>, vector<32x128xbf16>, vector<2x128xf32> -> vector<2x128xf32>
    %c0_8 = arith.constant 0 : index
    %c0_9 = arith.constant 0 : index
    %10 = vector.load %arg5[%c0_8, %c0_9] : memref<1x128xf32, #tpu.memory_space<vmem>>, vector<1x128xf32>
    %11 = vector.broadcast %10 : vector<1x128xf32> to vector<2x128xf32>
    %12 = arith.addf %9, %11 : vector<2x128xf32>
    %c0_10 = arith.constant 0 : index
    %c0_11 = arith.constant 0 : index
    %13 = vector.load %arg6[%c0_10, %c0_11] : memref<2x128xf32, #tpu.memory_space<vmem>>, vector<2x128xf32>
    tpu.vector_store %arg6[%c0_10, %c0_11], %12 {strides = array<i32>} : memref<2x128xf32, #tpu.memory_space<vmem>>, vector<2x128xf32>,
    return
  }
  func.func @transform_0(%arg0: i32) -> (i32, i32) {
    %c0_i32 = arith.constant 0 : i32
    %c0_i32_0 = arith.constant 0 : i32
    %c0_i32_1 = arith.constant 0 : i32
    return %c0_i32, %c0_i32_0 : i32, i32
  }
  func.func @transform_1(%arg0: i32) -> (i32, i32) {
    %c0_i32 = arith.constant 0 : i32
    %c0_i32_0 = arith.constant 0 : i32
    %c0_i32_1 = arith.constant 0 : i32
    return %c0_i32, %c0_i32_0 : i32, i32
  }
  func.func @transform_2(%arg0: i32) -> (i32, i32) {
    %c0_i32 = arith.constant 0 : i32
    %c0_i32_0 = arith.constant 0 : i32
    %c0_i32_1 = arith.constant 0 : i32
    return %c0_i32, %c0_i32_0 : i32, i32
  }
  func.func @transform_3(%arg0: i32) -> (i32, i32) {
    %c0_i32 = arith.constant 0 : i32
    %c0_i32_0 = arith.constant 0 : i32
    %c0_i32_1 = arith.constant 0 : i32
    return %c0_i32, %c0_i32_0 : i32, i32
  }
  func.func @transform_4(%arg0: i32) -> (i32, i32) {
    %c0_i32 = arith.constant 0 : i32
    %c0_i32_0 = arith.constant 0 : i32
    %c0_i32_1 = arith.constant 0 : i32
    return %c0_i32, %c0_i32_0 : i32, i32
  }
  func.func @transform_5(%arg0: i32) -> (i32, i32) {
    %c0_i32 = arith.constant 0 : i32
    %c0_i32_0 = arith.constant 0 : i32
    %c0_i32_1 = arith.constant 0 : i32
    return %c0_i32, %c0_i32_0 : i32, i32
  }
}

</mosaic_0001>

<bundles_post_ra>
// kernel: tpu_custom_call.1
= control target key start
LH: loop header
LB: loop body
LE: loop exit
PB: predicated region body
PF: predicated region fallthrough
CT: control target
= control target key end

     0   :  { %7 = vsyncpa [#allocation3], 0  ;;  %s417_s0 = inlined_call_operand.hbm [shape: f32[8,128], index: 0, kind: input, shape index: {}]   ;;  %s418_s1 = inlined_call_operand.hbm [shape: f32[8,128], index: 1, kind: input, shape index: {}]   ;;  %s419_s2 = inlined_call_operand.hbm [shape: f32[8,128], index: 2, kind: output, shape index: {}]  }
   0x1   :  { %8 = vsyncpa [#allocation6], 0 }
   0x2   :  { %9 = vsyncpa [#allocation4], 0  ;;  %s375_s9 = smov 0  }
   0x3 LB: > { %s95_s12 = sshll.u32 %s417_s0, 4  ;;  %s202_s13 = sadd.s32 4294967295, %s355_s9   ;;  %s355_s9 = sphi %s375_s9, %s15_s9   ;;  %s96_s12 = int_to_ptr.hbm [resolvable:$true] %s95_s12 }
   0x4   : > { %p203_p0 = scmp.ge.s32.totalorder %s355_s9, 1  ;;  %p83_p1 = scmp.lt.s32.totalorder %s355_s9, 3 }
   0x5   : > { %p386_p2 = scmp.eq.s32.totalorder %s202_s13, 0  ;;  %s357_s16 = smov [#allocation2]  }
   0x6   : > { %p390_p3 = pnand %p203_p0, %p83_p1  ;;  %s97_s17 = sshll.u32 %s357_s16, 4  ;;  %s98_s17 = int_to_ptr.vmem [resolvable:$true] %s97_s17 }
   0x7   : > { %s107_s20 = sshll.u32 %s418_s1, 4  ;;  %s358_s21 = smov [#allocation5]   ;;  %s108_s20 = int_to_ptr.hbm [resolvable:$true] %s107_s20 }
   0x8   : > { %p225_p4 = pneg %p390_p3  ;;  %s109_s22 = sshll.u32 %s358_s21, 4  ;;  %s110_s22 = int_to_ptr.vmem [resolvable:$true] %s109_s22 }
   0x9   : > { %122 = sbr.rel (%p390_p3) target bundleno = 24 (0x18), region = 28 }
   0xa   : > { %p226_p5 = pnand %p386_p2, %p225_p4 }
   0xc   : > { %228 = dma.hbm_to_vmem [thread:$0]  (!%p226_p5), %s96_s12, 128, %s98_s17, [#allocation3]  }
   0xd   : > { %231 = dma.hbm_to_vmem [thread:$0]  (!%p226_p5), %s108_s20, 128, %s110_s22, [#allocation6]  }
   0xe   : > { %342 = dma.done.wait (%p386_p2), [#allocation3], 128  }
   0xf   : > { %344 = vsyncadd (%p386_p2), [#allocation3], 4294967168 }
  0x10   : > { %346 = dma.done.wait (%p386_p2), [#allocation6], 128  }
  0x11   : > { %348 = vsyncadd (%p386_p2), [#allocation6], 4294967168  ;;  %s359_s23 = smov [#allocation7]   ;;  %s152_s27 = sshll.u32 %s419_s2, 4  ;;  %v140_v0 = vld [vmem:[#allocation2] sm:$0xff]  ;;  %v141_v1 = vld [vmem:[#allocation5] sm:$0xff]  ;;  %s153_s27 = int_to_ptr.hbm [resolvable:$true] %s152_s27 }
  0x12   : > { %s150_s24 = sshll.u32 %s359_s23, 4  ;;  %p236_p6 = scmp.eq.s32.totalorder %s202_s13, 1  ;;  %v142_v2 = vadd.f32 %v141_v1, %v140_v0  ;;  %s151_s24 = int_to_ptr.vmem [resolvable:$true] %s150_s24 }
  0x14   : > { %143 = vst [vmem:[#allocation7] sm:$0xff] %v142_v2 }
  0x15   : > { %222 = dma.vmem_to_hbm [thread:$0]  (%p236_p6), %s151_s24, 128, %s153_s27, [#allocation4]  }
  0x16   : > { %350 = dma.done.wait (%p236_p6), [#allocation4], 128  }
  0x17   : > { %352 = vsyncadd (%p236_p6), [#allocation4], 4294967168 }
  0x18 PF: > { %s15_s9 = sadd.s32 1, %s355_s9  }
  0x19   : > { %p12_p7 = scmp.ge.s32.totalorder %s15_s9, 4  }
  0x1b   :  { %14 = sbr.rel (!%p12_p7) target bundleno = 3 (0x3), region = 61 }
  0x20   :  { %166 = vsyncpa [#allocation3], 1 }
  0x21   :  { %168 = vsyncpa [#allocation3 + $0x1], 1 }
  0x22   :  { %169 = vsyncpa [#allocation6], 1 }
  0x23   :  { %170 = vsyncpa [#allocation4], 1 }
  0x24   :  { %172 = vsyncpa [#allocation4 + $0x1], 1 }

// kernel: basic_classifier_forward.11
= control target key start
LH: loop header
LB: loop body
LE: loop exit
PB: predicated region body
PF: predicated region fallthrough
CT: control target
= control target key end

     0   :  { %s537_s15 = smov 0   ;;  %s580_s0 = inlined_call_operand.vmem [shape: bf16[2,8,32], index: 0, kind: input, shape index: {}]   ;;  %s581_s1 = inlined_call_operand.vmem [shape: bf16[32,96], index: 1, kind: input, shape index: {}]   ;;  %s582_s2 = inlined_call_operand.vmem [shape: f32[1,96], index: 2, kind: input, shape index: {}]   ;;  %s583_s3 = inlined_call_operand.vmem [shape: f32[2,1,8], index: 3, kind: input, shape index: {}]   ;;  %s584_s4 = inlined_call_operand.vmem [shape: bf16[2,8,32], index: 4, kind: output, shape index: {}]  }
   0x1 LB: > { %s450_s16 = sadd.s32 4294967295, %s504_s15   ;;  %p454_p0 = scmp.ge.s32.totalorder %s504_s15, 1  ;;  %s504_s15 = sphi %s537_s15, %s14_s15  }
   0x2   : > { %p169_p1 = scmp.lt.s32.totalorder %s504_s15, 3 }
   0x4   : > { %p170_p2 = pnand %p454_p0, %p169_p1 }
   0x5   : > { %p196_p3 = scmp.lt.s32.totalorder (!%p170_p2), %s450_s16, 1  ;;  %s506_s27 = smov (!%p170_p2), 112  }
   0x6   : > { %173 = sbr.rel (%p170_p2) target bundleno = 913 (0x391), region = 36  ;;  %s507_s28 = smov (!%p170_p2), 96  }
   0x7   : > { %s508_s29 = smov (!%p170_p2), 80   ;;  %s509_s30 = smov (!%p170_p2), 64  }
   0x8   : > { %s510_s5 = smov (!%p170_p2), 48   ;;  %s511_s12 = smov (!%p170_p2), 16  }
   0xb   : > { %v473_v0 = vld [vmem:[%s581_s1 + $0x8] sm:$0xff]  ;;  %v472_v1 = vld [vmem:[%s581_s1] sm:$0xff]  ;;  %s586_s16 = smov (!%p196_p3, %s450_s16), 1  ;;  %vm229_vm0 = vcmask 261120   ;;  %vm247_vm1 = vcmask 781312   ;;  %vm256_vm2 = vcmask 130048  }
   0xc   : > { %239 = vmatpush.bf16.msra.mxu0 %v473_v0  ;;  %s455_s21 = sshll.u32 %s586_s16, 2  ;;  %v488_v3 = vld [vmem:[%s582_s2] ss:$0 sm:$0xff]  ;;  %s202_s8 = scalar_lea.vmem %s583_s3, %s586_s16  ;;  %vm299_vm3 = vcmask 1043456   ;;  %vm281_vm4 = vcmask 64512   ;;  %vm317_vm5 = vcmask 125952  }
   0xd   : > { %s199_s24 = scalar_lea.vmem %s580_s0, %s455_s21  ;;  %v489_v23 = vld [vmem:[%s202_s8] ss:$0 sm:$0xff]  ;;  %s206_s11 = scalar_lea.vmem %s584_s4, %s455_s21  ;;  %vm386_vm6 = vcmask 257152  }
   0xe   : > { %v208_v2 = vld [vmem:[%s199_s24] sm:$0xf] }
  0x10   : > { %240 = vmatpush.bf16.msra.mxu0 %v472_v1 }
  0x13   : > { %465 = vmatmul.msk.bf16.vlgmr.msra.gmra.mxu0 %vm229_vm0, %v208_v2 }
  0x90   : > { %v242_v4 = vpop.f32.mrf.mxu0 }
  0x91   : > { %v243_v5 = vadd.f32 %v488_v3, %v242_v4 }
  0x93   : > { %v246_v6 = vpack.c.bf16 %v243_v5, %v243_v5 }
  0x95   : > { %248 = vst.msk [vmem:[#allocation2] sm:$0xf] %vm247_vm1, %v246_v6 }
  0x98   : > { %v244_v7 = vpop.f32.mrf.mxu0 }
  0x9c   : > { %v319_v8 = vld [vmem:[#allocation2] sm:$0xf] }
  0x9d   : > { %v250_v9 = vld [vmem:[#allocation2] sm:$0xf]  ;;  %v321_v10 = vunpack.c.l.b16 %v319_v8 }
  0x9e   : > { %v252_v11 = vunpack.c.l.b16 %v250_v9 }
  0x9f   : > { %v322_v12 = vpack.c.b16 %v321_v10, %v321_v10 }
  0xa0   : > { %v253_v13 = vpack.c.b16 %v252_v11, %v252_v11 }
  0xa1   : > { %323 = vrot.lane.b32.xlu1 %v322_v12, %s506_s27 }
  0xa2   : > { %254 = vrot.lane.b32.xlu0 %v253_v13, %s507_s28 }
  0xaa   : > { %325 = vrot.lane.b32.xlu0 %v322_v12, %s508_s29 }
  0xb2   : > { %294 = vrot.lane.b32.xlu0 %v253_v13, %s509_s30 }
  0xba   : > { %360 = vrot.lane.b32.xlu0 %v322_v12, %s510_s5 }
 0x113   : > { %v324_v18 = vpop.permute.xlu1 %323 }
 0x114   : > { %v255_v14 = vpop.permute.xlu0 %254 }
 0x115   : > { %v261_v15 = vsel %vm256_vm2, %v255_v14, 0 }
 0x116   : > { %270 = vmatpush.bf16.xpose.msra.mxu1 %v261_v15 }
 0x11c   : > { %v326_v16 = vpop.permute.xlu0 %325 }
 0x11d   : > { %466 = vmatmul.msk.bf16.vlgmr.msra.gmra.mxu1 %vm256_vm2, %v250_v9  ;;  %v331_v17 = vsel %vm256_vm2, %v326_v16, 0 }
 0x11e   : > { %340 = vmatpush.bf16.xpose.msra.mxu3 %v331_v17 }
 0x124   : > { %v295_v19 = vpop.permute.xlu0 %294 }
 0x125   : > { %468 = vmatmul.msk.bf16.vlgmr.msra.gmra.mxu3 %vm256_vm2, %v324_v18  ;;  %v301_v20 = vsel %vm299_vm3, %v295_v19, 0 }
 0x126   : > { %310 = vmatpush.bf16.msra.mxu2 %v301_v20 }
 0x12c   : > { %v361_v21 = vpop.permute.xlu0 %360 }
 0x12d   : > { %v366_v22 = vsel %vm299_vm3, %v361_v21, 0 }
 0x12e   : > { %375 = vmatpush.bf16.msrb.mxu2 %v366_v22 }
 0x19a   : > { %v272_v24 = vpop.f32.mrf.mxu1 }
 0x19b   : > { %v276_v25 = vmul.f32 0.25, %v272_v24 }
 0x19d   : > { %v280_v26 = vadd.f32 %v489_v23, %v276_v25 }
 0x19f   : > { %v282_v27 = vsel %vm281_vm4, %v280_v26, -inf }
 0x1a0   : > { %283 = vmax.xlane.f32.xlu1 %v282_v27 }
 0x1a2   : > { %v274_v28 = vpop.f32.mrf.mxu1 }
 0x1a8   : > { %v342_v29 = vpop.f32.mrf.mxu3 }
 0x1a9   : > { %v346_v30 = vmul.f32 0.25, %v342_v29 }
 0x1ab   : > { %v347_v31 = vadd.f32 %v489_v23, %v346_v30 }
 0x1ad   : > { %v348_v32 = vsel %vm281_vm4, %v347_v31, -inf }
 0x1ae   : > { %349 = vmax.xlane.f32.xlu2 %v348_v32 }
 0x1b0   : > { %v344_v33 = vpop.f32.mrf.mxu3 }
 0x213   : > { %v284_v34 = vpop.xlane.xlu1 %283 }
 0x214   : > { %v285_v35 = vsub.f32 %v280_v26, %v284_v34 }
 0x216   : > { %v286_v36 = vmul.f32 1.442695, %v285_v35 }
 0x218   : > { %490 = vpow2.f32 %v286_v36 }
 0x21e   : > { %v491_v37 = vpop.eup %490 }
 0x21f   : > { %v288_v38 = vsel %vm281_vm4, %v491_v37, 0.0 }
 0x220   : > { %289 = vadd.xlane.f32.xlu2 %v288_v38 }
 0x221   : > { %v350_v39 = vpop.xlane.xlu2 %349 }
 0x222   : > { %v351_v40 = vsub.f32 %v347_v31, %v350_v39 }
 0x224   : > { %v352_v41 = vmul.f32 1.442695, %v351_v40 }
 0x226   : > { %492 = vpow2.f32 %v352_v41 }
 0x22c   : > { %v493_v42 = vpop.eup %492 }
 0x22d   : > { %v354_v43 = vsel %vm281_vm4, %v493_v42, 0.0 }
 0x22e   : > { %355 = vadd.xlane.f32.xlu2 %v354_v43 }
 0x293   : > { %v290_v44 = vpop.xlane.xlu2 %289 }
 0x294   : > { %494 = vrcp.f32 %v290_v44 }
 0x29a   : > { %v495_v45 = vpop.eup %494 }
 0x29b   : > { %v292_v46 = vmul.f32 %v495_v45, %v491_v37 }
 0x29d   : > { %v293_v47 = vpack.c.bf16 %v292_v46, %v292_v46 }
 0x29f   : > { %467 = vmatmul.msk.bf16.vlgmr.msra.gmra.mxu2 %vm281_vm4, %v293_v47 }
 0x2a1   : > { %v356_v48 = vpop.xlane.xlu2 %355 }
 0x2a2   : > { %496 = vrcp.f32 %v356_v48 }
 0x2a8   : > { %v497_v49 = vpop.eup %496 }
 0x2a9   : > { %v358_v50 = vmul.f32 %v497_v49, %v493_v42 }
 0x2ab   : > { %v359_v51 = vpack.c.bf16 %v358_v50, %v358_v50 }
 0x2af   : > { %469 = vmatmul.msk.bf16.vlgmr.msrb.gmra.mxu2 %vm281_vm4, %v359_v51 }
 0x322   : > { %v312_v52 = vpop.f32.mrf.mxu2 }
 0x323   : > { %v316_v53 = vpack.c.bf16 %v312_v52, %v312_v52 }
 0x325   : > { %318 = vst.msk [vmem:[%s206_s11] sm:$0xf] %vm317_vm5, %v316_v53 }
 0x32a   : > { %v314_v54 = vpop.f32.mrf.mxu2 }
 0x332   : > { %v377_v55 = vpop.f32.mrf.mxu2 }
 0x333   : > { %v381_v56 = vpack.c.bf16 %v377_v55, %v377_v55 }
 0x335   : > { %383 = vrot.lane.b32.xlu2 %v381_v56, %s511_s12 }
 0x33a   : > { %v379_v57 = vpop.f32.mrf.mxu2 }
 0x38f   : > { %v384_v58 = vpop.permute.xlu2 %383 }
 0x390   : > { %387 = vst.msk [vmem:[%s206_s11] sm:$0xf] %vm386_vm6, %v384_v58 }
 0x391 PF: > { %s14_s15 = sadd.s32 1, %s504_s15  }
 0x392   : > { %p11_p4 = scmp.ge.s32.totalorder %s14_s15, 4  }
 0x394   :  { %13 = sbr.rel (!%p11_p4) target bundleno = 1 (0x1), region = 69 }

// kernel: basic_classifier_forward.10
= control target key start
LH: loop header
LB: loop body
LE: loop exit
PB: predicated region body
PF: predicated region fallthrough
CT: control target
= control target key end

     0   :  { %vm16_vm0 = vcmask 261120   ;;  %v98_v4 = vmov 32.0   ;;  %vm82_vm6 = vcmask 257024   ;;  %s141_s0 = inlined_call_operand.vmem [shape: f32[16,32], index: 0, kind: input, shape index: {}]   ;;  %s142_s1 = inlined_call_operand.vmem [shape: f32[1,32], index: 1, kind: input, shape index: {}]   ;;  %s143_s2 = inlined_call_operand.vmem [shape: f32[1,32], index: 2, kind: input, shape index: {}]   ;;  %s144_s3 = inlined_call_operand.vmem [shape: bf16[16,32], index: 3, kind: output, shape index: {}]  }
   0x1   :  { %v14_v0 = vld [vmem:[%s141_s0] sm:$0xff]  ;;  %v15_v2 = vld [vmem:[%s141_s0 + $0x8] sm:$0xff]  ;;  %92 = vrcp.f32 %v98_v4 }
   0x2   :  { %v17_v1 = vsel %vm16_vm0, %v14_v0, 0.0  ;;  %v20_v3 = vsel %vm16_vm0, %v15_v2, 0.0  ;;  %v90_v35 = vld [vmem:[%s142_s1] ss:$0 sm:$0xff] }
   0x3   :  { %18 = vadd.xlane.f32.xlu0 %v17_v1  ;;  %v91_v38 = vld [vmem:[%s143_s2] ss:$0 sm:$0xff] }
   0x7   :  { %v93_v5 = vpop.eup %92 }
   0x8   :  { %v24_v6 = vmul.f32 32.0, %v93_v5  ;;  %vm28_vm1 = vweird.f32 %v93_v5 }
   0xa   :  { %v25_v7 = vsub.f32 1.0, %v24_v6 }
   0xb   :  { %21 = vadd.xlane.f32.xlu0 %v20_v3 }
   0xc   :  { %v26_v8 = vmul.f32 %v93_v5, %v25_v7 }
   0xe   :  { %v27_v9 = vadd.f32 %v93_v5, %v26_v8 }
  0x10   :  { %v29_v10 = vsel %vm28_vm1, %v93_v5, %v27_v9 }
  0x76   :  { %v19_v11 = vpop.xlane.xlu0 %18 }
  0x77   :  { %v30_v12 = vmul.f32 %v29_v10, %v19_v11 }
  0x79   :  { %v32_v13 = vsub.f32 %v14_v0, %v30_v12 }
  0x7b   :  { %v34_v14 = vmul.f32 %v32_v13, %v32_v13 }
  0x7d   :  { %v36_v15 = vsel %vm16_vm0, %v34_v14, 0.0 }
  0x7e   :  { %37 = vadd.xlane.f32.xlu1 %v36_v15  ;;  %v22_v16 = vpop.xlane.xlu0 %21 }
  0x7f   :  { %v31_v17 = vmul.f32 %v29_v10, %v22_v16 }
  0x81   :  { %v33_v18 = vsub.f32 %v15_v2, %v31_v17 }
  0x83   :  { %v35_v19 = vmul.f32 %v33_v18, %v33_v18 }
  0x85   :  { %v39_v20 = vsel %vm16_vm0, %v35_v19, 0.0 }
  0x86   :  { %40 = vadd.xlane.f32.xlu1 %v39_v20 }
  0xf1   :  { %v38_v21 = vpop.xlane.xlu1 %37 }
  0xf2   :  { %v42_v22 = vmul.f32 %v38_v21, %v29_v10 }
  0xf4   :  { %v44_v23 = vadd.f32 1e-12, %v42_v22 }
  0xf6   :  { %94 = vrsqrt.f32 %v44_v23  ;;  %vm52_vm3 = vweird.f32 %v44_v23 }
  0xf9   :  { %v41_v24 = vpop.xlane.xlu1 %40 }
  0xfa   :  { %v43_v25 = vmul.f32 %v41_v24, %v29_v10 }
  0xfc   :  { %v95_v26 = vpop.eup %94  ;;  %v45_v27 = vadd.f32 1e-12, %v43_v25 }
  0xfd   :  { %v47_v28 = vmul.f32 %v95_v26, %v44_v23  ;;  %vm53_vm2 = vweird.f32 %v95_v26 }
  0xfe   :  { %96 = vrsqrt.f32 %v45_v27  ;;  %vm54_vm4 = vmor %vm52_vm3, %vm53_vm2  ;;  %vm62_vm7 = vweird.f32 %v45_v27 }
  0xff   :  { %v48_v29 = vmul.f32 %v95_v26, %v47_v28 }
 0x101   :  { %v49_v30 = vmul.f32 0.5, %v48_v29 }
 0x103   :  { %v50_v31 = vsub.f32 1.5, %v49_v30 }
 0x104   :  { %v97_v32 = vpop.eup %96 }
 0x105   :  { %v51_v33 = vmul.f32 %v95_v26, %v50_v31  ;;  %v57_v34 = vmul.f32 %v97_v32, %v45_v27  ;;  %vm63_vm5 = vweird.f32 %v97_v32 }
 0x106   :  { %vm64_vm8 = vmor %vm62_vm7, %vm63_vm5 }
 0x107   :  { %v55_v36 = vsel %vm54_vm4, %v95_v26, %v51_v33  ;;  %v58_v37 = vmul.f32 %v97_v32, %v57_v34 }
 0x108   :  { %v66_v39 = vmul.f32 %v55_v36, %v32_v13 }
 0x109   :  { %v59_v40 = vmul.f32 0.5, %v58_v37 }
 0x10a   :  { %v72_v41 = vmul.f32 %v90_v35, %v66_v39 }
 0x10b   :  { %v60_v42 = vsub.f32 1.5, %v59_v40 }
 0x10c   :  { %v78_v43 = vadd.f32 %v91_v38, %v72_v41 }
 0x10d   :  { %v61_v44 = vmul.f32 %v97_v32, %v60_v42 }
 0x10e   :  { %v80_v45 = vpack.c.bf16 %v78_v43, %v78_v43 }
 0x10f   :  { %v65_v46 = vsel %vm64_vm8, %v97_v32, %v61_v44 }
 0x110   :  { %83 = vst.msk [vmem:[%s144_s3] sm:$0xf] %vm82_vm6, %v80_v45  ;;  %v67_v47 = vmul.f32 %v65_v46, %v33_v18 }
 0x112   :  { %v73_v48 = vmul.f32 %v90_v35, %v67_v47 }
 0x114   :  { %v79_v49 = vadd.f32 %v91_v38, %v73_v48 }
 0x116   :  { %v81_v50 = vpack.c.bf16 %v79_v49, %v79_v49 }
 0x118   :  { %84 = vst.msk [vmem:[%s144_s3 + $0x4] sm:$0xf] %vm82_vm6, %v81_v50 }

// kernel: basic_classifier_forward.13
= control target key start
LH: loop header
LB: loop body
LE: loop exit
PB: predicated region body
PF: predicated region fallthrough
CT: control target
= control target key end

     0   :  { %vm42_vm0 = vcmask 261120   ;;  %vm116_vm1 = vcmask 519168   ;;  %s182_s1 = inlined_call_operand.vmem [shape: bf16[32,64], index: 1, kind: input, shape index: {}]   ;;  %s183_s2 = inlined_call_operand.vmem [shape: f32[1,64], index: 2, kind: input, shape index: {}]   ;;  %s184_s0 = inlined_call_operand.vmem [shape: bf16[16,32], index: 0, kind: input, shape index: {}]   ;;  %s185_s3 = inlined_call_operand.vmem [shape: bf16[16,64], index: 3, kind: output, shape index: {}]  }
   0x1   :  { %v138_v0 = vld [vmem:[%s182_s1 + $0x8] sm:$0xff]  ;;  %v137_v1 = vld [vmem:[%s182_s1] sm:$0xff] }
   0x2   :  { %52 = vmatpush.bf16.msra.mxu0 %v138_v0  ;;  %v136_v2 = vld [vmem:[%s184_s0] sm:$0xff] }
   0x3   :  { %v139_v3 = vld [vmem:[%s183_s2] ss:$0 sm:$0xff] }
   0x6   :  { %53 = vmatpush.bf16.msra.mxu0 %v137_v1 }
   0x9   :  { %135 = vmatmul.msk.bf16.vlgmr.msra.gmra.mxu0 %vm42_vm0, %v136_v2 }
  0x86   :  { %v55_v4 = vpop.f32.mrf.mxu0 }
  0x87   :  { %v56_v5 = vadd.f32 %v139_v3, %v55_v4 }
  0x89   :  { %v60_v6 = vpack.c.bf16 %v56_v5, %v56_v5 }
  0x8b   :  { %v62_v7 = vunpack.c.l.bf16 %v60_v6 }
  0x8d   :  { %v68_v8 = vmul.f32 0.044677734, %v62_v7  ;;  %v64_v43 = vmul.f32 0.5, %v62_v7 }
  0x8e   :  { %v57_v9 = vpop.f32.mrf.mxu0 }
  0x8f   :  { %v70_v10 = vpack.c.bf16 %v68_v8, %v68_v8  ;;  %v58_v11 = vadd.f32 %v139_v3, %v57_v9  ;;  %v66_v46 = vpack.c.bf16 %v64_v43, %v64_v43 }
  0x91   :  { %v72_v12 = vunpack.c.l.bf16 %v70_v10  ;;  %v61_v13 = vpack.c.bf16 %v58_v11, %v58_v11  ;;  %v108_v50 = vunpack.c.l.bf16 %v66_v46 }
  0x93   :  { %v74_v14 = vmul.f32 %v72_v12, %v62_v7  ;;  %v63_v15 = vunpack.c.l.bf16 %v61_v13 }
  0x95   :  { %v76_v16 = vpack.c.bf16 %v74_v14, %v74_v14  ;;  %v69_v17 = vmul.f32 0.044677734, %v63_v15  ;;  %v65_v52 = vmul.f32 0.5, %v63_v15 }
  0x97   :  { %v78_v18 = vunpack.c.l.bf16 %v76_v16  ;;  %v71_v19 = vpack.c.bf16 %v69_v17, %v69_v17  ;;  %v67_v57 = vpack.c.bf16 %v65_v52, %v65_v52 }
  0x99   :  { %v80_v20 = vmul.f32 %v78_v18, %v62_v7  ;;  %v73_v21 = vunpack.c.l.bf16 %v71_v19  ;;  %v109_v60 = vunpack.c.l.bf16 %v67_v57 }
  0x9b   :  { %v82_v22 = vpack.c.bf16 %v80_v20, %v80_v20  ;;  %v75_v23 = vmul.f32 %v73_v21, %v63_v15 }
  0x9d   :  { %v84_v24 = vunpack.c.l.bf16 %v82_v22  ;;  %v77_v25 = vpack.c.bf16 %v75_v23, %v75_v23 }
  0x9f   :  { %v86_v26 = vadd.f32 %v84_v24, %v62_v7  ;;  %v79_v27 = vunpack.c.l.bf16 %v77_v25 }
  0xa1   :  { %v88_v28 = vpack.c.bf16 %v86_v26, %v86_v26  ;;  %v81_v29 = vmul.f32 %v79_v27, %v63_v15 }
  0xa3   :  { %v90_v30 = vunpack.c.l.bf16 %v88_v28  ;;  %v83_v31 = vpack.c.bf16 %v81_v29, %v81_v29 }
  0xa5   :  { %v92_v32 = vmul.f32 0.796875, %v90_v30  ;;  %v85_v33 = vunpack.c.l.bf16 %v83_v31 }
  0xa7   :  { %v94_v34 = vpack.c.bf16 %v92_v32, %v92_v32  ;;  %v87_v35 = vadd.f32 %v85_v33, %v63_v15 }
  0xa9   :  { %v96_v36 = vunpack.c.l.bf16 %v94_v34  ;;  %v89_v37 = vpack.c.bf16 %v87_v35, %v87_v35 }
  0xab   :  { %140 = vtanh.f32 %v96_v36  ;;  %v91_v38 = vunpack.c.l.bf16 %v89_v37 }
  0xad   :  { %v93_v39 = vmul.f32 0.796875, %v91_v38 }
  0xaf   :  { %v95_v40 = vpack.c.bf16 %v93_v39, %v93_v39 }
  0xb1   :  { %v141_v41 = vpop.eup %140  ;;  %v97_v42 = vunpack.c.l.bf16 %v95_v40 }
  0xb2   :  { %v100_v44 = vpack.c.bf16 %v141_v41, %v141_v41 }
  0xb3   :  { %142 = vtanh.f32 %v97_v42 }
  0xb4   :  { %v102_v45 = vunpack.c.l.bf16 %v100_v44 }
  0xb6   :  { %v104_v47 = vadd.f32 1.0, %v102_v45 }
  0xb8   :  { %v106_v48 = vpack.c.bf16 %v104_v47, %v104_v47 }
  0xb9   :  { %v143_v49 = vpop.eup %142 }
  0xba   :  { %v110_v51 = vunpack.c.l.bf16 %v106_v48  ;;  %v101_v53 = vpack.c.bf16 %v143_v49, %v143_v49 }
  0xbc   :  { %v112_v54 = vmul.f32 %v110_v51, %v108_v50  ;;  %v103_v55 = vunpack.c.l.bf16 %v101_v53 }
  0xbe   :  { %v114_v56 = vpack.c.bf16 %v112_v54, %v112_v54  ;;  %v105_v58 = vadd.f32 1.0, %v103_v55 }
  0xc0   :  { %117 = vst.msk [vmem:[%s185_s3] sm:$0xf] %vm116_vm1, %v114_v56  ;;  %v107_v59 = vpack.c.bf16 %v105_v58, %v105_v58 }
  0xc2   :  { %v111_v61 = vunpack.c.l.bf16 %v107_v59 }
  0xc4   :  { %v113_v62 = vmul.f32 %v111_v61, %v109_v60 }
  0xc6   :  { %v115_v63 = vpack.c.bf16 %v113_v62, %v113_v62 }
  0xc8   :  { %118 = vst.msk [vmem:[%s185_s3 + $0x4] sm:$0xf] %vm116_vm1, %v115_v63 }

// kernel: basic_classifier_forward.12
= control target key start
LH: loop header
LB: loop body
LE: loop exit
PB: predicated region body
PF: predicated region fallthrough
CT: control target
= control target key end

     0   :  { %vm51_vm0 = vcmask 261120   ;;  %v177_v15 = vmov 32.0   ;;  %vm140_vm6 = vcmask 257024   ;;  %s245_s1 = inlined_call_operand.vmem [shape: bf16[32,32], index: 1, kind: input, shape index: {}]   ;;  %s246_s2 = inlined_call_operand.vmem [shape: f32[1,32], index: 2, kind: input, shape index: {}]   ;;  %s247_s0 = inlined_call_operand.vmem [shape: bf16[16,32], index: 0, kind: input, shape index: {}]   ;;  %s248_s3 = inlined_call_operand.vmem [shape: bf16[16,32], index: 3, kind: input, shape index: {}]   ;;  %s249_s4 = inlined_call_operand.vmem [shape: f32[1,32], index: 4, kind: input, shape index: {}]   ;;  %s250_s5 = inlined_call_operand.vmem [shape: f32[1,32], index: 5, kind: input, shape index: {}]   ;;  %s251_s6 = inlined_call_operand.vmem [shape: bf16[16,32], index: 6, kind: output, shape index: {}]  }
   0x1   :  { %v162_v0 = vld [vmem:[%s245_s1 + $0x8] sm:$0xff]  ;;  %v161_v1 = vld [vmem:[%s245_s1] sm:$0xff]  ;;  %171 = vrcp.f32 %v177_v15 }
   0x2   :  { %61 = vmatpush.bf16.msra.mxu0 %v162_v0  ;;  %v160_v2 = vld [vmem:[%s247_s0] sm:$0xff] }
   0x3   :  { %v164_v3 = vld [vmem:[%s248_s3] sm:$0xff]  }
   0x4   :  { %v168_v4 = vld [vmem:[%s246_s2] ss:$0 sm:$0xff]  ;;  %v165_v5 = vunpack.c.l.bf16 %v164_v3  ;;  %v166_v10 = vunpack.c.h.bf16 %v164_v3 }
   0x5   :  { %v169_v46 = vld [vmem:[%s249_s4] ss:$0 sm:$0xff] }
   0x6   :  { %62 = vmatpush.bf16.msra.mxu0 %v161_v1  ;;  %v170_v49 = vld [vmem:[%s250_s5] ss:$0 sm:$0xff] }
   0x7   :  { %v172_v16 = vpop.eup %171 }
   0x8   :  { %v82_v17 = vmul.f32 32.0, %v172_v16  ;;  %vm86_vm1 = vweird.f32 %v172_v16 }
   0x9   :  { %159 = vmatmul.msk.bf16.vlgmr.msra.gmra.mxu0 %vm51_vm0, %v160_v2 }
   0xa   :  { %v83_v18 = vsub.f32 1.0, %v82_v17 }
   0xc   :  { %v84_v19 = vmul.f32 %v172_v16, %v83_v18 }
   0xe   :  { %v85_v20 = vadd.f32 %v172_v16, %v84_v19 }
  0x10   :  { %v87_v21 = vsel %vm86_vm1, %v172_v16, %v85_v20 }
  0x86   :  { %v64_v6 = vpop.f32.mrf.mxu0 }
  0x87   :  { %v65_v7 = vadd.f32 %v168_v4, %v64_v6 }
  0x89   :  { %v73_v8 = vadd.f32 %v165_v5, %v65_v7 }
  0x8b   :  { %v75_v9 = vsel %vm51_vm0, %v73_v8, 0.0 }
  0x8c   :  { %76 = vadd.xlane.f32.xlu0 %v75_v9 }
  0x8e   :  { %v66_v11 = vpop.f32.mrf.mxu0 }
  0x8f   :  { %v67_v12 = vadd.f32 %v168_v4, %v66_v11 }
  0x91   :  { %v74_v13 = vadd.f32 %v166_v10, %v67_v12 }
  0x93   :  { %v78_v14 = vsel %vm51_vm0, %v74_v13, 0.0 }
  0x94   :  { %79 = vadd.xlane.f32.xlu0 %v78_v14 }
  0xff   :  { %v77_v22 = vpop.xlane.xlu0 %76 }
 0x100   :  { %v88_v23 = vmul.f32 %v87_v21, %v77_v22 }
 0x102   :  { %v90_v24 = vsub.f32 %v73_v8, %v88_v23 }
 0x104   :  { %v92_v25 = vmul.f32 %v90_v24, %v90_v24 }
 0x106   :  { %v94_v26 = vsel %vm51_vm0, %v92_v25, 0.0 }
 0x107   :  { %95 = vadd.xlane.f32.xlu1 %v94_v26  ;;  %v80_v27 = vpop.xlane.xlu0 %79 }
 0x108   :  { %v89_v28 = vmul.f32 %v87_v21, %v80_v27 }
 0x10a   :  { %v91_v29 = vsub.f32 %v74_v13, %v89_v28 }
 0x10c   :  { %v93_v30 = vmul.f32 %v91_v29, %v91_v29 }
 0x10e   :  { %v97_v31 = vsel %vm51_vm0, %v93_v30, 0.0 }
 0x10f   :  { %98 = vadd.xlane.f32.xlu1 %v97_v31 }
 0x17a   :  { %v96_v32 = vpop.xlane.xlu1 %95 }
 0x17b   :  { %v100_v33 = vmul.f32 %v96_v32, %v87_v21 }
 0x17d   :  { %v102_v34 = vadd.f32 1e-12, %v100_v33 }
 0x17f   :  { %173 = vrsqrt.f32 %v102_v34  ;;  %vm110_vm3 = vweird.f32 %v102_v34 }
 0x182   :  { %v99_v35 = vpop.xlane.xlu1 %98 }
 0x183   :  { %v101_v36 = vmul.f32 %v99_v35, %v87_v21 }
 0x185   :  { %v174_v37 = vpop.eup %173  ;;  %v103_v38 = vadd.f32 1e-12, %v101_v36 }
 0x186   :  { %v105_v39 = vmul.f32 %v174_v37, %v102_v34  ;;  %vm111_vm2 = vweird.f32 %v174_v37 }
 0x187   :  { %175 = vrsqrt.f32 %v103_v38  ;;  %vm112_vm4 = vmor %vm110_vm3, %vm111_vm2  ;;  %vm120_vm7 = vweird.f32 %v103_v38 }
 0x188   :  { %v106_v40 = vmul.f32 %v174_v37, %v105_v39 }
 0x18a   :  { %v107_v41 = vmul.f32 0.5, %v106_v40 }
 0x18c   :  { %v108_v42 = vsub.f32 1.5, %v107_v41 }
 0x18d   :  { %v176_v43 = vpop.eup %175 }
 0x18e   :  { %v109_v44 = vmul.f32 %v174_v37, %v108_v42  ;;  %v115_v45 = vmul.f32 %v176_v43, %v103_v38  ;;  %vm121_vm5 = vweird.f32 %v176_v43 }
 0x18f   :  { %vm122_vm8 = vmor %vm120_vm7, %vm121_vm5 }
 0x190   :  { %v113_v47 = vsel %vm112_vm4, %v174_v37, %v109_v44  ;;  %v116_v48 = vmul.f32 %v176_v43, %v115_v45 }
 0x191   :  { %v124_v50 = vmul.f32 %v113_v47, %v90_v24 }
 0x192   :  { %v117_v51 = vmul.f32 0.5, %v116_v48 }
 0x193   :  { %v130_v52 = vmul.f32 %v169_v46, %v124_v50 }
 0x194   :  { %v118_v53 = vsub.f32 1.5, %v117_v51 }
 0x195   :  { %v136_v54 = vadd.f32 %v170_v49, %v130_v52 }
 0x196   :  { %v119_v55 = vmul.f32 %v176_v43, %v118_v53 }
 0x197   :  { %v138_v56 = vpack.c.bf16 %v136_v54, %v136_v54 }
 0x198   :  { %v123_v57 = vsel %vm122_vm8, %v176_v43, %v119_v55 }
 0x199   :  { %141 = vst.msk [vmem:[%s251_s6] sm:$0xf] %vm140_vm6, %v138_v56  ;;  %v125_v58 = vmul.f32 %v123_v57, %v91_v29 }
 0x19b   :  { %v131_v59 = vmul.f32 %v169_v46, %v125_v58 }
 0x19d   :  { %v137_v60 = vadd.f32 %v170_v49, %v131_v59 }
 0x19f   :  { %v139_v61 = vpack.c.bf16 %v137_v60, %v137_v60 }
 0x1a1   :  { %142 = vst.msk [vmem:[%s251_s6 + $0x4] sm:$0xf] %vm140_vm6, %v139_v61 }

// kernel: basic_classifier_forward.14
= control target key start
LH: loop header
LB: loop body
LE: loop exit
PB: predicated region body
PF: predicated region fallthrough
CT: control target
= control target key end

     0   :  { %vm67_vm0 = vcmask 523264   ;;  %vm91_vm1 = vcmask 261120   ;;  %v204_v17 = vmov 32.0   ;;  %vm157_vm7 = vcmask 257024   ;;  %s277_s1 = inlined_call_operand.vmem [shape: bf16[64,32], index: 1, kind: input, shape index: {}]   ;;  %s278_s2 = inlined_call_operand.vmem [shape: f32[1,32], index: 2, kind: input, shape index: {}]   ;;  %s279_s0 = inlined_call_operand.vmem [shape: bf16[16,64], index: 0, kind: input, shape index: {}]   ;;  %s280_s3 = inlined_call_operand.vmem [shape: bf16[16,32], index: 3, kind: input, shape index: {}]   ;;  %s281_s4 = inlined_call_operand.vmem [shape: f32[1,32], index: 4, kind: input, shape index: {}]   ;;  %s282_s5 = inlined_call_operand.vmem [shape: f32[1,32], index: 5, kind: input, shape index: {}]   ;;  %s283_s6 = inlined_call_operand.vmem [shape: bf16[16,32], index: 6, kind: output, shape index: {}]  }
   0x1   :  { %v189_v0 = vld [vmem:[%s277_s1 + $0x18] sm:$0xff]  ;;  %v188_v1 = vld [vmem:[%s277_s1 + $0x10] sm:$0xff]  ;;  %v187_v2 = vld [vmem:[%s277_s1 + $0x8] sm:$0xff]  ;;  %198 = vrcp.f32 %v204_v17 }
   0x2   :  { %75 = vmatpush.bf16.msra.mxu0 %v189_v0  ;;  %v186_v3 = vld [vmem:[%s277_s1] sm:$0xff] }
   0x3   :  { %v185_v4 = vld [vmem:[%s279_s0] sm:$0xff] }
   0x4   :  { %v191_v5 = vld [vmem:[%s280_s3] sm:$0xff]  }
   0x5   :  { %v195_v6 = vld [vmem:[%s278_s2] ss:$0 sm:$0xff]  ;;  %v192_v7 = vunpack.c.l.bf16 %v191_v5  ;;  %v193_v12 = vunpack.c.h.bf16 %v191_v5 }
   0x6   :  { %76 = vmatpush.bf16.msra.mxu0 %v188_v1  ;;  %v196_v48 = vld [vmem:[%s281_s4] ss:$0 sm:$0xff] }
   0x7   :  { %v199_v18 = vpop.eup %198  ;;  %v197_v51 = vld [vmem:[%s282_s5] ss:$0 sm:$0xff] }
   0x8   :  { %v99_v19 = vmul.f32 32.0, %v199_v18  ;;  %vm103_vm2 = vweird.f32 %v199_v18 }
   0xa   :  { %77 = vmatpush.bf16.msra.mxu0 %v187_v2  ;;  %v100_v20 = vsub.f32 1.0, %v99_v19 }
   0xc   :  { %v101_v21 = vmul.f32 %v199_v18, %v100_v20 }
   0xe   :  { %78 = vmatpush.bf16.msra.mxu0 %v186_v3  ;;  %v102_v22 = vadd.f32 %v199_v18, %v101_v21 }
  0x10   :  { %v104_v23 = vsel %vm103_vm2, %v199_v18, %v102_v22 }
  0x11   :  { %184 = vmatmul.msk.bf16.vlgmr.msra.gmra.mxu0 %vm67_vm0, %v185_v4 }
  0x8e   :  { %v80_v8 = vpop.f32.mrf.mxu0 }
  0x8f   :  { %v81_v9 = vadd.f32 %v195_v6, %v80_v8 }
  0x91   :  { %v89_v10 = vadd.f32 %v192_v7, %v81_v9 }
  0x93   :  { %v92_v11 = vsel %vm91_vm1, %v89_v10, 0.0 }
  0x94   :  { %93 = vadd.xlane.f32.xlu0 %v92_v11 }
  0x96   :  { %v82_v13 = vpop.f32.mrf.mxu0 }
  0x97   :  { %v83_v14 = vadd.f32 %v195_v6, %v82_v13 }
  0x99   :  { %v90_v15 = vadd.f32 %v193_v12, %v83_v14 }
  0x9b   :  { %v95_v16 = vsel %vm91_vm1, %v90_v15, 0.0 }
  0x9c   :  { %96 = vadd.xlane.f32.xlu0 %v95_v16 }
 0x107   :  { %v94_v24 = vpop.xlane.xlu0 %93 }
 0x108   :  { %v105_v25 = vmul.f32 %v104_v23, %v94_v24 }
 0x10a   :  { %v107_v26 = vsub.f32 %v89_v10, %v105_v25 }
 0x10c   :  { %v109_v27 = vmul.f32 %v107_v26, %v107_v26 }
 0x10e   :  { %v111_v28 = vsel %vm91_vm1, %v109_v27, 0.0 }
 0x10f   :  { %112 = vadd.xlane.f32.xlu1 %v111_v28  ;;  %v97_v29 = vpop.xlane.xlu0 %96 }
 0x110   :  { %v106_v30 = vmul.f32 %v104_v23, %v97_v29 }
 0x112   :  { %v108_v31 = vsub.f32 %v90_v15, %v106_v30 }
 0x114   :  { %v110_v32 = vmul.f32 %v108_v31, %v108_v31 }
 0x116   :  { %v114_v33 = vsel %vm91_vm1, %v110_v32, 0.0 }
 0x117   :  { %115 = vadd.xlane.f32.xlu1 %v114_v33 }
 0x182   :  { %v113_v34 = vpop.xlane.xlu1 %112 }
 0x183   :  { %v117_v35 = vmul.f32 %v113_v34, %v104_v23 }
 0x185   :  { %v119_v36 = vadd.f32 1e-12, %v117_v35 }
 0x187   :  { %200 = vrsqrt.f32 %v119_v36  ;;  %vm127_vm4 = vweird.f32 %v119_v36 }
 0x18a   :  { %v116_v37 = vpop.xlane.xlu1 %115 }
 0x18b   :  { %v118_v38 = vmul.f32 %v116_v37, %v104_v23 }
 0x18d   :  { %v201_v39 = vpop.eup %200  ;;  %v120_v40 = vadd.f32 1e-12, %v118_v38 }
 0x18e   :  { %v122_v41 = vmul.f32 %v201_v39, %v119_v36  ;;  %vm128_vm3 = vweird.f32 %v201_v39 }
 0x18f   :  { %202 = vrsqrt.f32 %v120_v40  ;;  %vm129_vm5 = vmor %vm127_vm4, %vm128_vm3  ;;  %vm137_vm8 = vweird.f32 %v120_v40 }
 0x190   :  { %v123_v42 = vmul.f32 %v201_v39, %v122_v41 }
 0x192   :  { %v124_v43 = vmul.f32 0.5, %v123_v42 }
 0x194   :  { %v125_v44 = vsub.f32 1.5, %v124_v43 }
 0x195   :  { %v203_v45 = vpop.eup %202 }
 0x196   :  { %v126_v46 = vmul.f32 %v201_v39, %v125_v44  ;;  %v132_v47 = vmul.f32 %v203_v45, %v120_v40  ;;  %vm138_vm6 = vweird.f32 %v203_v45 }
 0x197   :  { %vm139_vm9 = vmor %vm137_vm8, %vm138_vm6 }
 0x198   :  { %v130_v49 = vsel %vm129_vm5, %v201_v39, %v126_v46  ;;  %v133_v50 = vmul.f32 %v203_v45, %v132_v47 }
 0x199   :  { %v141_v52 = vmul.f32 %v130_v49, %v107_v26 }
 0x19a   :  { %v134_v53 = vmul.f32 0.5, %v133_v50 }
 0x19b   :  { %v147_v54 = vmul.f32 %v196_v48, %v141_v52 }
 0x19c   :  { %v135_v55 = vsub.f32 1.5, %v134_v53 }
 0x19d   :  { %v153_v56 = vadd.f32 %v197_v51, %v147_v54 }
 0x19e   :  { %v136_v57 = vmul.f32 %v203_v45, %v135_v55 }
 0x19f   :  { %v155_v58 = vpack.c.bf16 %v153_v56, %v153_v56 }
 0x1a0   :  { %v140_v59 = vsel %vm139_vm9, %v203_v45, %v136_v57 }
 0x1a1   :  { %158 = vst.msk [vmem:[%s283_s6] sm:$0xf] %vm157_vm7, %v155_v58  ;;  %v142_v60 = vmul.f32 %v140_v59, %v108_v31 }
 0x1a3   :  { %v148_v61 = vmul.f32 %v196_v48, %v142_v60 }
 0x1a5   :  { %v154_v62 = vadd.f32 %v197_v51, %v148_v61 }
 0x1a7   :  { %v156_v63 = vpack.c.bf16 %v154_v62, %v154_v62 }
 0x1a9   :  { %159 = vst.msk [vmem:[%s283_s6 + $0x4] sm:$0xf] %vm157_vm7, %v156_v63 }

// kernel: basic_classifier_forward.19
= control target key start
LH: loop header
LB: loop body
LE: loop exit
PB: predicated region body
PF: predicated region fallthrough
CT: control target
= control target key end

     0   :  { %s223_s0 = inlined_call_operand.vmem [shape: bf16[2,32], index: 0, kind: input, shape index: {}]   ;;  %s224_s1 = inlined_call_operand.vmem [shape: bf16[32,32], index: 1, kind: input, shape index: {}]   ;;  %s225_s2 = inlined_call_operand.vmem [shape: f32[1,32], index: 2, kind: input, shape index: {}]   ;;  %s226_s3 = inlined_call_operand.vmem [shape: bf16[32,128], index: 3, kind: input, shape index: {}]   ;;  %s227_s4 = inlined_call_operand.vmem [shape: f32[1,128], index: 4, kind: input, shape index: {}]   ;;  %s228_s5 = inlined_call_operand.hbm [shape: f32[2,128], index: 5, kind: output, shape index: {}]  }
   0x1   :  { %v134_v0 = vld [vmem:[%s224_s1 + $0x8] sm:$0xff]  ;;  %v133_v1 = vld [vmem:[%s224_s1] sm:$0xff] }
   0x2   :  { %53 = vmatpush.bf16.msra.mxu0 %v134_v0 }
   0x3   :  { %10 = vsyncpa [#allocation3], 0  ;;  %v22_v2 = vld [vmem:[%s223_s0] sm:$0x1]  ;;  %vm43_vm0 = vcmask 261120   ;;  %v136_v3 = vld [vmem:[%s226_s3 + $0x8] sm:$0xff] }
   0x4   :  { %91 = vmatpush.bf16.msra.mxu1 %v136_v3  ;;  %v135_v4 = vld [vmem:[%s226_s3] sm:$0xff]  ;;  %s168_s30 = smov [#allocation2]   ;;  %s106_s8 = sshll.u32 %s228_s5, 4  ;;  %s107_s8 = int_to_ptr.hbm [resolvable:$true] %s106_s8 }
   0x5   :  { %v138_v5 = vld [vmem:[%s225_s2] ss:$0 sm:$0xff]  ;;  %s104_s6 = sshll.u32 %s168_s30, 4  ;;  %s105_s6 = int_to_ptr.vmem [resolvable:$true] %s104_s6 }
   0x6   :  { %54 = vmatpush.bf16.msra.mxu0 %v133_v1  ;;  %v139_v11 = vld [vmem:[%s227_s4] ss:$0 sm:$0xff] }
   0x8   :  { %92 = vmatpush.bf16.msra.mxu1 %v135_v4 }
   0x9   :  { %123 = vmatmul.msk.bf16.vlgmr.msra.gmra.mxu0 %vm43_vm0, %v22_v2 }
  0x86   :  { %v56_v6 = vpop.f32.mrf.mxu0 }
  0x87   :  { %v57_v7 = vadd.f32 %v138_v5, %v56_v6 }
  0x89   :  { %140 = vtanh.f32 %v57_v7 }
  0x8e   :  { %v58_v8 = vpop.f32.mrf.mxu0 }
  0x8f   :  { %v141_v9 = vpop.eup %140 }
  0x90   :  { %v61_v10 = vpack.c.bf16 %v141_v9, %v141_v9 }
  0x92   :  { %132 = vmatmul.msk.bf16.vlgmr.msra.gmra.mxu1 %vm43_vm0, %v61_v10 }
 0x10f   :  { %v94_v12 = vpop.f32.mrf.mxu1 }
 0x110   :  { %v95_v13 = vadd.f32 %v139_v11, %v94_v12 }
 0x112   :  { %98 = vst [vmem:[#allocation2] sm:$0x3] %v95_v13 }
 0x113   :  { %109 = dma.vmem_to_hbm [thread:$0]  %s105_s6, 32, %s107_s8, [#allocation3]  }
 0x117   :  { %v96_v14 = vpop.f32.mrf.mxu1 }
 0x118   :  { %166 = dma.done.wait [#allocation3], 32  }
 0x119   :  { %167 = vsyncadd [#allocation3], 4294967264 }
 0x11a   :  { %114 = vsyncpa [#allocation3], 1 }

</bundles_post_ra>
